<compile_context>
chip_gen: v7x
topology: tpu7x:2x2x1
jax: 0.10.0
libtpu: 0.0.40
codegen_flags: <defaults>
</compile_context>

<pallas_src>
import jax
import jax.numpy as jnp
from jax.experimental import pallas as pl
from jax.experimental.pallas import tpu as pltpu

HIDDEN = 512


def _disc_kernel(m1_ref, w0m_ref, yall_ref, w0y_ref, b0_ref,
                 w1_ref, b1_ref, w2_ref, b2_ref, o_ref, h0m_acc):
    """Fused real+fake 3-layer MLP discriminator.

    grid axis 0 streams the layer-0 reduction dim (m1 @ W0_m) in TK chunks.
    On the last step the shared h0_m accumulator is combined with the per-branch
    Y projections and the remaining (small, VMEM-resident) layers run once on
    the stacked (2B, 512) activations.
    """
    k = pl.program_id(0)

    @pl.when(k == 0)
    def _init():
        h0m_acc[...] = jnp.zeros_like(h0m_acc)

    # Dominant cost: streamed bf16 tile of W0_m, f32 accumulation.
    h0m_acc[...] += jnp.dot(m1_ref[...].astype(jnp.bfloat16), w0m_ref[...],
                            preferred_element_type=jnp.float32)

    @pl.when(k == pl.num_programs(0) - 1)
    def _finalize():
        h0m = h0m_acc[...]                                        # (B, 512)
        # Per-branch Y projection: rows [0:B] = real (Y), rows [B:2B] = fake
        # (shift1(Y)); stacked in the wrapper so layers 1/2 run once.
        h0y = jnp.dot(yall_ref[...].astype(jnp.bfloat16), w0y_ref[...],
                      preferred_element_type=jnp.float32)         # (2B, 512)
        b0 = b0_ref[...].astype(jnp.float32)
        h0 = jnp.maximum(jnp.concatenate([h0m, h0m], axis=0) + h0y + b0, 0.0)

        h1 = jnp.dot(h0.astype(jnp.bfloat16), w1_ref[...],
                     preferred_element_type=jnp.float32)
        h1 = jnp.maximum(h1 + b1_ref[...].astype(jnp.float32), 0.0)

        logit = jnp.dot(h1, w2_ref[...],
                        preferred_element_type=jnp.float32) + b2_ref[...]
        o_ref[...] = jax.nn.sigmoid(logit)                        # (2B, 1)


def shift1(Y):
    # numpy: select = [1, 2, ..., N-1, 0]  ==  roll by -1 along the batch axis
    return jnp.roll(Y, shift=-1, axis=0)


def global_discriminator_full(M, Y, params, tk_max=2048):
    """Mirrors GlobalDiscriminatorFull.forward (real + fake + losses)."""
    w0_m, w0_y, b0, w1, b1, w2, b2 = params
    B = M.shape[0]
    m1 = M.reshape(B, -1).astype(jnp.float32)        # flatten(start_dim=1)
    Dm = m1.shape[1]
    Dy = Y.shape[1]
    H = w1.shape[0]

    # Stack real / fake Y rows so both branches share one kernel invocation.
    y_all = jnp.concatenate([Y, shift1(Y)], axis=0).astype(jnp.float32)

    # --- layer-0 reduction tiling (lane-aligned, VMEM-budgeted) ------------
    # TK<=2048 keeps the double-buffered bf16 W0_m stream at ~4 MiB, safe on
    # v5e/v6e (16/32 MiB scoped default) and v7x (64 MiB physical).
    lane = 128
    dm_lane = pl.cdiv(Dm, lane) * lane
    tk = min(max(lane, (tk_max // lane) * lane), dm_lane)
    nk = pl.cdiv(dm_lane, tk)
    dm_pad = nk * tk
    if dm_pad != Dm:
        m1 = jnp.pad(m1, ((0, 0), (0, dm_pad - Dm)))
        w0_m = jnp.pad(w0_m, ((0, dm_pad - Dm), (0, 0)))

    # NOTE: with the real/fake branches fused (shared h0_m) and B tiny there is
    # nothing useful to shard across v7x's two TensorCores; a parallel batch-tile
    # axis would only pay off for much larger B.
    out = pl.pallas_call(
        _disc_kernel,
        out_shape=jax.ShapeDtypeStruct((2 * B, 1), jnp.float32),
        grid_spec=pltpu.PrefetchScalarGridSpec(
            num_scalar_prefetch=0,
            grid=(nk,),
            in_specs=[
                pl.BlockSpec((B, tk), lambda k: (0, k)),        # m1 tile
                pl.BlockSpec((tk, H), lambda k: (k, 0)),        # W0_m tile (bf16)
                pl.BlockSpec((2 * B, Dy), lambda k: (0, 0)),    # [Y; shift1(Y)]
                pl.BlockSpec((Dy, H), lambda k: (0, 0)),        # W0_y (bf16)
                pl.BlockSpec((1, H), lambda k: (0, 0)),         # b0
                pl.BlockSpec((H, H), lambda k: (0, 0)),         # W1 (bf16)
                pl.BlockSpec((1, H), lambda k: (0, 0)),         # b1
                pl.BlockSpec((H, 1), lambda k: (0, 0)),         # W2
                pl.BlockSpec((1, 1), lambda k: (0, 0)),         # b2
            ],
            out_specs=pl.BlockSpec((2 * B, 1), lambda k: (0, 0)),
            scratch_shapes=[pltpu.VMEM((B, H), jnp.float32)],   # h0_m accumulator
        ),
        compiler_params=pltpu.CompilerParams(
            dimension_semantics=("arbitrary",),
            vmem_limit_bytes=32 * 1024 * 1024,
        ),
    )(m1, w0_m, y_all, w0_y, b0, w1, b1, w2, b2)

    real = out[:B]                                   # (B, 1) probabilities
    fake = out[B:]                                   # (B, 1) probabilities

    eps = 1e-07
    loss_encoder = -jnp.mean(jnp.log(real + eps))
    loss_disc = -jnp.mean(jnp.log(1.0 - fake + eps)) + loss_encoder
    return dict(
        global_encoder_loss=loss_encoder,
        global_fake=fake.mean(),
        global_real=real.mean(),
        global_discriminator_loss=loss_disc,
    )


def init_params(key, dm, dy):
    # TODO(synk): `init_weights` is not defined in the provided snippet; use a
    # deterministic small-normal init for weights and zero biases instead.
    k0, k1, k2 = jax.random.split(key, 3)
    w0 = jax.random.normal(k0, (dm + dy, HIDDEN), jnp.float32) * 0.02
    w0_m = w0[:dm].astype(jnp.bfloat16)              # rows multiplying flattened M
    w0_y = w0[dm:].astype(jnp.bfloat16)              # rows multiplying Y
    b0 = jnp.zeros((1, HIDDEN), jnp.float32)
    w1 = (jax.random.normal(k1, (HIDDEN, HIDDEN), jnp.float32) * 0.02
          ).astype(jnp.bfloat16)
    b1 = jnp.zeros((1, HIDDEN), jnp.float32)
    w2 = jax.random.normal(k2, (HIDDEN, 1), jnp.float32) * 0.02
    b2 = jnp.zeros((1, 1), jnp.float32)
    return (w0_m, w0_y, b0, w1, b1, w2, b2)


def _reference(M, Y, params):
    """Pure-JAX reference with the same bf16-operand / f32-accumulate math."""
    w0_m, w0_y, b0, w1, b1, w2, b2 = params
    B = M.shape[0]
    m1 = M.reshape(B, -1)

    def fwd(y):
        h0 = (jnp.dot(m1.astype(jnp.bfloat16), w0_m, preferred_element_type=jnp.float32)
              + jnp.dot(y.astype(jnp.bfloat16), w0_y, preferred_element_type=jnp.float32)
              + b0)
        h0 = jnp.maximum(h0, 0.0)
        h1 = jnp.maximum(
            jnp.dot(h0.astype(jnp.bfloat16), w1, preferred_element_type=jnp.float32) + b1,
            0.0)
        logit = jnp.dot(h1, w2, preferred_element_type=jnp.float32) + b2
        return jax.nn.sigmoid(logit)

    real, fake = fwd(Y), fwd(shift1(Y))
    eps = 1e-07
    le = -jnp.mean(jnp.log(real + eps))
    ld = -jnp.mean(jnp.log(1.0 - fake + eps)) + le
    return dict(global_encoder_loss=le, global_fake=fake.mean(),
                global_real=real.mean(), global_discriminator_loss=ld)


if __name__ == "__main__":
    key = jax.random.PRNGKey(0)
    k_m, k_y, k_p = jax.random.split(key, 3)

    B, C, Hs, Ws = 2, 4, 16, 16          # M: NCHW
    DY = 64                              # Y feature dim
    Dm = C * Hs * Ws                     # 1024

    M = jax.random.normal(k_m, (B, C, Hs, Ws), jnp.float32)
    Y = jax.random.normal(k_y, (B, DY), jnp.float32)
    params = init_params(k_p, Dm, DY)

    # tk_max=256 -> 4 grid steps over the layer-0 reduction dim (exercises the
    # streamed accumulator path even at this small demo size).
    out = global_discriminator_full(M, Y, params, tk_max=256)
    jax.block_until_ready(out)

    ref = _reference(M, Y, params)
    max_diff = max(float(jnp.abs(out[k] - ref[k])) for k in out)
    assert max_diff < 1e-3, f"mismatch vs reference: {max_diff}"
    print("KERNEL_OK")
</pallas_src>

<mosaic_0001>
module attributes {stable_mosaic.version = 11 : i64} {
  func.func @_disc_kernel(%arg0: i32, %arg1: memref<2x256xf32, #tpu.memory_space<vmem>>, %arg2: memref<256x512xbf16, #tpu.memory_space<vmem>>, %arg3: memref<4x64xf32, #tpu.memory_space<vmem>>, %arg4: memref<64x512xbf16, #tpu.memory_space<vmem>>, %arg5: memref<1x512xf32, #tpu.memory_space<vmem>>, %arg6: memref<512x512xbf16, #tpu.memory_space<vmem>>, %arg7: memref<1x512xf32, #tpu.memory_space<vmem>>, %arg8: memref<512x1xf32, #tpu.memory_space<vmem>>, %arg9: memref<1x1xf32, #tpu.memory_space<vmem>>, %arg10: memref<4x1xf32, #tpu.memory_space<vmem>>, %arg11: memref<2x512xf32, #tpu.memory_space<vmem>>) attributes {dimension_semantics = [#tpu.dimension_semantics<arbitrary>], iteration_bounds = array<i64: 4>, scalar_prefetch = 0 : i64, scratch_operands = 1 : i64, tpu.core_type = #tpu.core_type<tc>, window_params = [{transform_indices = @transform_0, window_bounds = array<i64: 2, 256>}, {transform_indices = @transform_1, window_bounds = array<i64: 256, 512>}, {pipeline_mode = #tpu.pipeline_mode<synchronous>, transform_indices = @transform_2, window_bounds = array<i64: 4, 64>}, {pipeline_mode = #tpu.pipeline_mode<synchronous>, transform_indices = @transform_3, window_bounds = array<i64: 64, 512>}, {pipeline_mode = #tpu.pipeline_mode<synchronous>, transform_indices = @transform_4, window_bounds = array<i64: 1, 512>}, {pipeline_mode = #tpu.pipeline_mode<synchronous>, transform_indices = @transform_5, window_bounds = array<i64: 512, 512>}, {pipeline_mode = #tpu.pipeline_mode<synchronous>, transform_indices = @transform_6, window_bounds = array<i64: 1, 512>}, {pipeline_mode = #tpu.pipeline_mode<synchronous>, transform_indices = @transform_7, window_bounds = array<i64: 512, 1>}, {pipeline_mode = #tpu.pipeline_mode<synchronous>, transform_indices = @transform_8, window_bounds = array<i64: 1, 1>}, {pipeline_mode = #tpu.pipeline_mode<synchronous>, transform_indices = @transform_9, window_bounds = array<i64: 4, 1>}]} {
    %c0_i32 = arith.constant 0 : i32
    %0 = arith.cmpi eq, %arg0, %c0_i32 : i32
    %1 = arith.extui %0 : i1 to i32
    %c0_i32_0 = arith.constant 0 : i32
    %2 = arith.cmpi ne, %1, %c0_i32_0 : i32
    scf.if %2 {
      %cst_9 = arith.constant 0.000000e+00 : f32
      %13 = vector.broadcast %cst_9 : f32 to vector<2x512xf32>
      %c0_10 = arith.constant 0 : index
      %c0_11 = arith.constant 0 : index
      %14 = vector.load %arg11[%c0_10, %c0_11] : memref<2x512xf32, #tpu.memory_space<vmem>>, vector<2x512xf32>
      tpu.vector_store %arg11[%c0_10, %c0_11], %13 {strides = array<i32>} : memref<2x512xf32, #tpu.memory_space<vmem>>, vector<2x512xf32>,
    } else {
    }
    %c0 = arith.constant 0 : index
    %c0_1 = arith.constant 0 : index
    %3 = vector.load %arg11[%c0, %c0_1] : memref<2x512xf32, #tpu.memory_space<vmem>>, vector<2x512xf32>
    %c0_2 = arith.constant 0 : index
    %c0_3 = arith.constant 0 : index
    %4 = vector.load %arg1[%c0_2, %c0_3] : memref<2x256xf32, #tpu.memory_space<vmem>>, vector<2x256xf32>
    %5 = arith.truncf %4 : vector<2x256xf32> to vector<2x256xbf16>
    %c0_4 = arith.constant 0 : index
    %c0_5 = arith.constant 0 : index
    %6 = vector.load %arg2[%c0_4, %c0_5] : memref<256x512xbf16, #tpu.memory_space<vmem>>, vector<256x512xbf16>
    %cst = arith.constant dense<0.000000e+00> : vector<2x512xf32>
    %7 = tpu.matmul %5, %6, %cst {dimension_numbers = #tpu.dot_dimension_numbers<[1], [0], [0], [1], [0, 0, 1, 1], [], []>} : vector<2x256xbf16>, vector<256x512xbf16>, vector<2x512xf32> -> vector<2x512xf32>
    %8 = arith.addf %3, %7 : vector<2x512xf32>
    %c0_6 = arith.constant 0 : index
    %c0_7 = arith.constant 0 : index
    %9 = vector.load %arg11[%c0_6, %c0_7] : memref<2x512xf32, #tpu.memory_space<vmem>>, vector<2x512xf32>
    tpu.vector_store %arg11[%c0_6, %c0_7], %8 {strides = array<i32>} : memref<2x512xf32, #tpu.memory_space<vmem>>, vector<2x512xf32>,
    %c3_i32 = arith.constant 3 : i32
    %10 = arith.cmpi eq, %arg0, %c3_i32 : i32
    %11 = arith.extui %10 : i1 to i32
    %c0_i32_8 = arith.constant 0 : i32
    %12 = arith.cmpi ne, %11, %c0_i32_8 : i32
    scf.if %12 {
      %c0_9 = arith.constant 0 : index
      %c0_10 = arith.constant 0 : index
      %13 = vector.load %arg11[%c0_9, %c0_10] : memref<2x512xf32, #tpu.memory_space<vmem>>, vector<2x512xf32>
      %c0_11 = arith.constant 0 : index
      %c0_12 = arith.constant 0 : index
      %14 = vector.load %arg3[%c0_11, %c0_12] : memref<4x64xf32, #tpu.memory_space<vmem>>, vector<4x64xf32>
      %15 = arith.truncf %14 : vector<4x64xf32> to vector<4x64xbf16>
      %c0_13 = arith.constant 0 : index
      %c0_14 = arith.constant 0 : index
      %16 = vector.load %arg4[%c0_13, %c0_14] : memref<64x512xbf16, #tpu.memory_space<vmem>>, vector<64x512xbf16>
      %cst_15 = arith.constant dense<0.000000e+00> : vector<4x512xf32>
      %17 = tpu.matmul %15, %16, %cst_15 {dimension_numbers = #tpu.dot_dimension_numbers<[1], [0], [0], [1], [0, 0, 1, 1], [], []>} : vector<4x64xbf16>, vector<64x512xbf16>, vector<4x512xf32> -> vector<4x512xf32>
      %c0_16 = arith.constant 0 : index
      %c0_17 = arith.constant 0 : index
      %18 = vector.load %arg5[%c0_16, %c0_17] : memref<1x512xf32, #tpu.memory_space<vmem>>, vector<1x512xf32>
      %19 = tpu.concatenate %13, %13 in 0 : vector<2x512xf32>, vector<2x512xf32> -> vector<4x512xf32>
      %20 = arith.addf %19, %17 : vector<4x512xf32>
      %21 = vector.broadcast %18 : vector<1x512xf32> to vector<4x512xf32>
      %22 = arith.addf %20, %21 : vector<4x512xf32>
      %cst_18 = arith.constant 0.000000e+00 : f32
      %23 = vector.broadcast %cst_18 : f32 to vector<4x512xf32>
      %24 = arith.maximumf %22, %23 : vector<4x512xf32>
      %25 = arith.truncf %24 : vector<4x512xf32> to vector<4x512xbf16>
      %c0_19 = arith.constant 0 : index
      %c0_20 = arith.constant 0 : index
      %26 = vector.load %arg6[%c0_19, %c0_20] : memref<512x512xbf16, #tpu.memory_space<vmem>>, vector<512x512xbf16>
      %cst_21 = arith.constant dense<0.000000e+00> : vector<4x512xf32>
      %27 = tpu.matmul %25, %26, %cst_21 {dimension_numbers = #tpu.dot_dimension_numbers<[1], [0], [0], [1], [0, 0, 1, 1], [], []>} : vector<4x512xbf16>, vector<512x512xbf16>, vector<4x512xf32> -> vector<4x512xf32>
      %c0_22 = arith.constant 0 : index
      %c0_23 = arith.constant 0 : index
      %28 = vector.load %arg7[%c0_22, %c0_23] : memref<1x512xf32, #tpu.memory_space<vmem>>, vector<1x512xf32>
      %29 = vector.broadcast %28 : vector<1x512xf32> to vector<4x512xf32>
      %30 = arith.addf %27, %29 : vector<4x512xf32>
      %cst_24 = arith.constant 0.000000e+00 : f32
      %31 = vector.broadcast %cst_24 : f32 to vector<4x512xf32>
      %32 = arith.maximumf %30, %31 : vector<4x512xf32>
      %c0_25 = arith.constant 0 : index
      %c0_26 = arith.constant 0 : index
      %33 = vector.load %arg8[%c0_25, %c0_26] : memref<512x1xf32, #tpu.memory_space<vmem>>, vector<512x1xf32>
      %cst_27 = arith.constant dense<0.000000e+00> : vector<4x1xf32>
      %34 = tpu.matmul %32, %33, %cst_27 {dimension_numbers = #tpu.dot_dimension_numbers<[1], [0], [0], [1], [0, 0, 1, 1], [], []>} : vector<4x512xf32>, vector<512x1xf32>, vector<4x1xf32> -> vector<4x1xf32>
      %c0_28 = arith.constant 0 : index
      %c0_29 = arith.constant 0 : index
      %35 = vector.load %arg9[%c0_28, %c0_29] : memref<1x1xf32, #tpu.memory_space<vmem>>, vector<1x1xf32>
      %36 = vector.broadcast %35 : vector<1x1xf32> to vector<4x1xf32>
      %37 = arith.addf %34, %36 : vector<4x1xf32>
      %38 = arith.negf %37 : vector<4x1xf32>
      %39 = math.exp %38 : vector<4x1xf32>
      %cst_30 = arith.constant 1.000000e+00 : f32
      %40 = vector.broadcast %cst_30 : f32 to vector<4x1xf32>
      %41 = arith.addf %40, %39 : vector<4x1xf32>
      %42 = arith.divf %40, %41 : vector<4x1xf32>
      %c0_31 = arith.constant 0 : index
      %c0_32 = arith.constant 0 : index
      %43 = vector.load %arg10[%c0_31, %c0_32] : memref<4x1xf32, #tpu.memory_space<vmem>>, vector<4x1xf32>
      tpu.vector_store %arg10[%c0_31, %c0_32], %42 {strides = array<i32>} : memref<4x1xf32, #tpu.memory_space<vmem>>, vector<4x1xf32>,
    } else {
    }
    return
  }
  func.func @transform_0(%arg0: i32) -> (i32, i32) {
    %c0_i32 = arith.constant 0 : i32
    %c0_i32_0 = arith.constant 0 : i32
    return %c0_i32, %arg0 : i32, i32
  }
  func.func @transform_1(%arg0: i32) -> (i32, i32) {
    %c0_i32 = arith.constant 0 : i32
    %c0_i32_0 = arith.constant 0 : i32
    return %arg0, %c0_i32 : i32, i32
  }
  func.func @transform_2(%arg0: i32) -> (i32, i32) {
    %c0_i32 = arith.constant 0 : i32
    %c0_i32_0 = arith.constant 0 : i32
    %c0_i32_1 = arith.constant 0 : i32
    return %c0_i32, %c0_i32_0 : i32, i32
  }
  func.func @transform_3(%arg0: i32) -> (i32, i32) {
    %c0_i32 = arith.constant 0 : i32
    %c0_i32_0 = arith.constant 0 : i32
    %c0_i32_1 = arith.constant 0 : i32
    return %c0_i32, %c0_i32_0 : i32, i32
  }
  func.func @transform_4(%arg0: i32) -> (i32, i32) {
    %c0_i32 = arith.constant 0 : i32
    %c0_i32_0 = arith.constant 0 : i32
    %c0_i32_1 = arith.constant 0 : i32
    return %c0_i32, %c0_i32_0 : i32, i32
  }
  func.func @transform_5(%arg0: i32) -> (i32, i32) {
    %c0_i32 = arith.constant 0 : i32
    %c0_i32_0 = arith.constant 0 : i32
    %c0_i32_1 = arith.constant 0 : i32
    return %c0_i32, %c0_i32_0 : i32, i32
  }
  func.func @transform_6(%arg0: i32) -> (i32, i32) {
    %c0_i32 = arith.constant 0 : i32
    %c0_i32_0 = arith.constant 0 : i32
    %c0_i32_1 = arith.constant 0 : i32
    return %c0_i32, %c0_i32_0 : i32, i32
  }
  func.func @transform_7(%arg0: i32) -> (i32, i32) {
    %c0_i32 = arith.constant 0 : i32
    %c0_i32_0 = arith.constant 0 : i32
    %c0_i32_1 = arith.constant 0 : i32
    return %c0_i32, %c0_i32_0 : i32, i32
  }
  func.func @transform_8(%arg0: i32) -> (i32, i32) {
    %c0_i32 = arith.constant 0 : i32
    %c0_i32_0 = arith.constant 0 : i32
    %c0_i32_1 = arith.constant 0 : i32
    return %c0_i32, %c0_i32_0 : i32, i32
  }
  func.func @transform_9(%arg0: i32) -> (i32, i32) {
    %c0_i32 = arith.constant 0 : i32
    %c0_i32_0 = arith.constant 0 : i32
    %c0_i32_1 = arith.constant 0 : i32
    return %c0_i32, %c0_i32_0 : i32, i32
  }
}

</mosaic_0001>

<bundles_post_ra>
// kernel: tpu_custom_call.1
= control target key start
LH: loop header
LB: loop body
LE: loop exit
PB: predicated region body
PF: predicated region fallthrough
CT: control target
= control target key end

     0   :  { %s3813_s0 = inlined_call_operand.vmem [shape: f32[2,1024], index: 0, kind: input, shape index: {}]   ;;  %s3814_s1 = inlined_call_operand.hbm [shape: bf16[1024,512], index: 1, kind: input, shape index: {}]   ;;  %s3815_s2 = inlined_call_operand.vmem [shape: f32[4,64], index: 2, kind: input, shape index: {}]   ;;  %s3816_s3 = inlined_call_operand.vmem [shape: bf16[64,512], index: 3, kind: input, shape index: {}]   ;;  %s3817_s4 = inlined_call_operand.vmem [shape: f32[1,512], index: 4, kind: input, shape index: {}]   ;;  %s3818_s5 = inlined_call_operand.hbm [shape: bf16[512,512], index: 5, kind: input, shape index: {}]   ;;  %s3819_s6 = inlined_call_operand.vmem [shape: f32[1,512], index: 6, kind: input, shape index: {}]   ;;  %s3820_s7 = inlined_call_operand.vmem [shape: f32[512,1], index: 7, kind: input, shape index: {}]   ;;  %s3821_s8 = inlined_call_operand.<no memory space> [shape: f32[1,1], index: 8, kind: input, shape index: {}]   ;;  %s3822_s9 = inlined_call_operand.vmem [shape: f32[4,1], index: 9, kind: output, shape index: {}]  }
   0x1   :  { %v14_v0 = vstv %s3821_s8 }
   0x2   :  { %15 = vst [vmem:[#allocation3] sm:$0x1] %v14_v0 }
   0x3   :  { %16 = vsyncpa [#allocation5], 0 }
   0x4   :  { %18 = vsyncpa [#allocation5 + $0x1], 0 }
   0x5   :  { %19 = vsyncpa [#allocation7], 0  ;;  %s3302_s11 = smov 0   ;;  %s3304_s12 = smov 0  }
   0x6   :  { %s3306_s13 = smov 0   ;;  %s3308_s14 = smov 0  }
   0x7 LB: > { %s3321_s8 = sadd.s32 4294967295, %s3240_s14   ;;  %p71_p0 = scmp.ne.s32.totalorder %s3232_s12, %s3228_s11  ;;  %s3240_s14 = sphi %s3308_s14, %s3838_s14   ;;  %s3236_s13 = sphi %s3306_s13, %s3837_s13   ;;  %s3232_s12 = sphi %s3304_s12, %s3836_s12   ;;  %s3228_s11 = sphi %s3302_s11, %s3835_s11  }
   0x8   : > { %p3823_p1 = scmp.eq.s32.totalorder %s3321_s8, 0  ;;  %p2394_p2 = scmp.ge.s32.totalorder %s3240_s14, 1 }
   0x9   : > { %p250_p3 = scmp.lt.s32.totalorder %s3240_s14, 5  ;;  %s3242_s17 = smov [#allocation6]  }
   0xa   : > { %p3330_p5 = por %p3823_p1, %p71_p0  ;;  %s271_s18 = sshll.u32 %s3242_s17, 4  ;;  %s272_s18 = int_to_ptr.vmem [resolvable:$true] %s271_s18 }
   0xb   : > { %p3334_p6 = pnand %p2394_p2, %p250_p3  ;;  %s3347_s20 = sadd.s32 1, %s3240_s14  }
   0xc   : > { %s3826_s15 = scalar_select %p3330_p5, 1, 0 }
   0xd   : > { %s3827_s16 = scalar_select %p3334_p6, 1, 0 }
   0xe   : > { %p2777_p7 = pneg %p3334_p6  ;;  %s58_s21 = sadd.s32 1, %s3236_s13 }
   0xf   : > { %s55_s22 = ssub.s32 %s3240_s14, %s3347_s20  ;;  %s3144_s25 = scalar_lea.hbm %s3818_s5, 16384 }
  0x10   : > { %p3342_p8 = pnand %p2777_p7, %p3823_p1  ;;  %p3145_p9 = scmp.ne.s32.totalorder %s3818_s5, %s3144_s25 }
  0x11   : > { %p3151_p13 = scmp.lt.u32.totalorder %s3144_s25, %s3818_s5 }
  0x12   : > { %p3146_p10 = pneg %p3342_p8 }
  0x14   : > { %p3147_p11 = pnand %p3146_p10, %p3145_p9 }
  0x16   : > { %p3148_p12 = pneg %p3147_p11 }
  0x18   : > { %p3153_p0 = pnand %p3151_p13, %p3148_p12 }
  0x1a   : > { %3156 = shalt.err (!%p3153_p0)
}
  0x1b   : > { %s3157_s30 = scalar_lea.vmem %s272_s18, 16384  ;;  %p3165_p4 = scmp.lt.s32.totalorder %s272_s18, %s272_s18 }
  0x1c   : > { %p3158_p2 = scmp.ne.s32.totalorder %s272_s18, %s3157_s30  ;;  %p3166_p1 = scmp.lt.s32.totalorder %s3157_s30, %s3157_s30 }
  0x1e   : > { %p3160_p3 = pnand %p3158_p2, %p3146_p10  ;;  %p3167_p5 = por %p3166_p1, %p3165_p4 }
  0x20   : > { %p3161_p7 = pneg %p3160_p3 }
  0x22   : > { %p3168_p6 = pnand %p3167_p5, %p3161_p7 }
  0x24   : > { %3171 = shalt.err (!%p3168_p6)
}
  0x25   : > { %s3243_s10 = smov 256   ;;  %s3244_s11 = smov 16  }
  0x26   : > { %2780 = dma.hbm_to_vmem [thread:$0]  (!%p3342_p8), %s3818_s5, 16384, %s272_s18, [#allocation7], %s3243_s10, %s3243_s10, %s3244_s11  }
  0x27   : > { %p56_p1 = scmp.eq.s32.totalorder %s55_s22, 0  ;;  %p65_p4 = scmp.ne.s32.totalorder %s3236_s13, %s3232_s12 }
  0x28   : > { %p66_p5 = scmp.eq.s32.totalorder %s3240_s14, 0  ;;  %p2786_p6 = scmp.lt.s32.totalorder %s3240_s14, 4 }
  0x29   : > { %s3376_s24 = scalar_select %p56_p1, %s3236_s13, %s58_s21  }
  0x2a   : > { %p67_p9 = por %p66_p5, %p65_p4  ;;  %s303_s25 = sand.u32 1, %s3236_s13  }
  0x2b   : > { %s2397_s26 = sshll.u32 %s303_s25, 9  ;;  %s2624_s27 = sshll.u32 %s3240_s14, 13 }
  0x2c   : > { %s3383_s19 = scalar_lea.hbm %s3814_s1, %s2624_s27  ;;  %s307_s18 = scalar_lea.vmem [#allocation4], %s2397_s26 }
  0x2d   : > { %s315_s22 = sshll.u32 %s307_s18, 4  ;;  %p3387_p8 = pnand %p2786_p6, %p67_p9  ;;  %s3385_s22 = int_to_ptr.vmem [resolvable:$true] %s315_s22 }
  0x2e   : > { %s3391_s14 = scalar_lea.sflag [#allocation5], %s303_s25  ;;  %s3172_s30 = scalar_lea.hbm %s3383_s19, 8192 }
  0x2f   : > { %p3173_p10 = scmp.ne.s32.totalorder %s3383_s19, %s3172_s30  ;;  %p3174_p11 = pneg %p3387_p8 }
  0x30   : > { %s3177_s26 = scalar_lea.hbm %s3814_s1, 32768  ;;  %p3178_p0 = scmp.lt.u32.totalorder %s3383_s19, %s3814_s1 }
  0x31   : > { %p3175_p12 = pnand %p3174_p11, %p3173_p10  ;;  %p3179_p2 = scmp.lt.u32.totalorder %s3177_s26, %s3172_s30 }
  0x32   : > { %p3181_p7 = scmp.lt.u32.totalorder %s3172_s30, %s3383_s19 }
  0x33   : > { %p3176_p13 = pneg %p3175_p12  ;;  %p3180_p3 = por %p3179_p2, %p3178_p0 }
  0x35   : > { %p3182_p1 = por %p3181_p7, %p3180_p3 }
  0x37   : > { %p3183_p4 = pnand %p3182_p1, %p3176_p13 }
  0x39   : > { %3186 = shalt.err (!%p3183_p4)
}
  0x3a   : > { %s3187_s25 = scalar_lea.vmem %s3385_s22, 8192  ;;  %s3245_s29 = smov [#allocation4]  }
  0x3b   : > { %p3188_p5 = scmp.ne.s32.totalorder %s3385_s22, %s3187_s25  ;;  %s3192_s18 = sshll.u32 %s3245_s29, 4  ;;  %s3193_s18 = int_to_ptr.vmem [resolvable:$false] %s3192_s18 }
  0x3c   : > { %s3194_s17 = scalar_lea.vmem %s3193_s18, 16384  ;;  %p3195_p10 = scmp.lt.s32.totalorder %s3385_s22, %s3193_s18 }
  0x3d   : > { %p3190_p6 = pnand %p3188_p5, %p3174_p11  ;;  %p3196_p12 = scmp.lt.s32.totalorder %s3194_s17, %s3187_s25 }
  0x3f   : > { %p3191_p9 = pneg %p3190_p6  ;;  %p3197_p0 = por %p3196_p12, %p3195_p10 }
  0x41   : > { %p3198_p2 = pnand %p3197_p0, %p3191_p9 }
  0x43   : > { %3201 = shalt.err (!%p3198_p2)
}
  0x44   : > { %2784 = dma.hbm_to_vmem [thread:$0]  (!%p3387_p8), %s3383_s19, 8192, %s3385_s22, %s3391_s14, %s3243_s10, %s3243_s10, %s3244_s11  }
  0x45   : > { %p3830_p11 = scmp.ne.s32.totalorder %s3827_s16, 0 }
  0x46   : > { %s329_s30 = sand.u32 (!%p3830_p11), 1, %s3232_s12   ;;  %p3831_p13 = scmp.ne.s32.totalorder (!%p3830_p11), %s3826_s15, 0 }
  0x47   : > { %327 = sbr.rel (%p3830_p11) target bundleno = 1120 (0x460), region = 56  ;;  %s2402_s23 = sshll.u32 (!%p3830_p11), %s329_s30, 9 }
  0x48   : > { %s330_s26 = scalar_lea.sflag (!%p3830_p11), [#allocation5], %s329_s30  ;;  %s3425_s27 = scalar_lea.vmem (!%p3830_p11), [#allocation4], %s2402_s23 }
  0x4e   : > { %3219 = dma.done.wait (%p3831_p13), %s330_s26, 8192  }
  0x4f   : > { %3221 = vsyncadd (%p3831_p13), %s330_s26, 4294959104  ;;  %p3832_p3 = scmp.eq.s32.totalorder %s3321_s8, 0 }
  0x51   : > { %3223 = dma.done.wait (%p3832_p3), [#allocation7], 16384   ;;  %p3833_p8 = pmov %p3832_p3 }
  0x52   : > { %s2404_s16 = sshll.u32 %s3321_s8, 1  ;;  %p3834_p1 = scmp.ne.s32.totalorder %s3321_s8, 0 }
  0x53   : > { %3225 = vsyncadd (%p3833_p8), [#allocation7], 4294950912  ;;  %p373_p7 = scmp.lt.s32.totalorder %s2404_s16, 7  ;;  %v3246_v1 = vmov (!%p3834_p1), 0.0  }
  0x54   : > { %383 = sbr.rel (%p3834_p1) target bundleno = 91 (0x5b), region = 68  ;;  %384 = vst [vmem:[#allocation2] sm:$0xff] (!%p3834_p1), %v3246_v1 }
  0x55   : > { %s3840_s16 = smov (!%p373_p7, %s2404_s16), 7 }
  0x56   : > { %s2405_s10 = sshll.u32 %s3840_s16, 1 }
  0x57   : > { %s3439_s22 = scalar_lea.vmem %s3813_s0, %s2405_s10 }
  0x5b PF: > { %v2826_v2 = vld [vmem:[%s3425_s27 + $0x4] ss:$16 sps:$4 sm:$0xff]   ;;  %v2828_v3 = vld [vmem:[%s3425_s27 + $0xc] ss:$16 sps:$4 sm:$0xff]   ;;  %v2830_v4 = vld [vmem:[%s3425_s27] ss:$16 sps:$4 sm:$0xff]  }
  0x5c   : > { %784 = vmatprep.subr.bf16.mxu0 %v2826_v2  ;;  %v2831_v5 = vld [vmem:[%s3425_s27 + $0x8] ss:$16 sps:$4 sm:$0xff]   ;;  %825 = vmatprep.subr.bf16.mxu1 %v2828_v3  ;;  %v2832_v6 = vld [vmem:[%s3425_s27 + $0x24] ss:$16 sps:$4 sm:$0xff]   ;;  %v2834_v7 = vld [vmem:[%s3425_s27 + $0x2c] ss:$16 sps:$4 sm:$0xff]  }
  0x5d   : > { %785 = vmatpush1.bf16.msra.mxu0 %v2830_v4  ;;  %826 = vmatpush1.bf16.msra.mxu1 %v2831_v5  ;;  %v2836_v8 = vld [vmem:[%s3425_s27 + $0x20] ss:$16 sps:$4 sm:$0xff]   ;;  %v2837_v9 = vld [vmem:[%s3425_s27 + $0x28] ss:$16 sps:$4 sm:$0xff]   ;;  %v2838_v10 = vld [vmem:[%s3425_s27 + $0x44] ss:$16 sps:$4 sm:$0xff]  }
  0x5e   : > { %786 = vmatprep.subr.bf16.mxu0 %v2832_v6  ;;  %827 = vmatprep.subr.bf16.mxu1 %v2834_v7  ;;  %v2840_v11 = vld [vmem:[%s3425_s27 + $0x4c] ss:$16 sps:$4 sm:$0xff]   ;;  %v2842_v12 = vld [vmem:[%s3425_s27 + $0x40] ss:$16 sps:$4 sm:$0xff]   ;;  %v2843_v13 = vld [vmem:[%s3425_s27 + $0x48] ss:$16 sps:$4 sm:$0xff]  }
  0x5f   : > { %v2844_v14 = vld [vmem:[%s3425_s27 + $0x64] ss:$16 sps:$4 sm:$0xff]   ;;  %v2846_v15 = vld [vmem:[%s3425_s27 + $0x6c] ss:$16 sps:$4 sm:$0xff]   ;;  %v2848_v16 = vld [vmem:[%s3425_s27 + $0x60] ss:$16 sps:$4 sm:$0xff]  }
  0x60   : > { %v2849_v17 = vld [vmem:[%s3425_s27 + $0x68] ss:$16 sps:$4 sm:$0xff]   ;;  %v2850_v18 = vld [vmem:[%s3425_s27 + $0x84] ss:$16 sps:$4 sm:$0xff]   ;;  %v2852_v19 = vld [vmem:[%s3425_s27 + $0x8c] ss:$16 sps:$4 sm:$0xff]  }
  0x61   : > { %787 = vmatpush1.bf16.msra.mxu0 %v2836_v8  ;;  %828 = vmatpush1.bf16.msra.mxu1 %v2837_v9  ;;  %v2854_v20 = vld [vmem:[%s3425_s27 + $0x80] ss:$16 sps:$4 sm:$0xff]   ;;  %v2855_v21 = vld [vmem:[%s3425_s27 + $0x88] ss:$16 sps:$4 sm:$0xff]   ;;  %v2856_v22 = vld [vmem:[%s3425_s27 + $0xa4] ss:$16 sps:$4 sm:$0xff]   ;;  %v875_v8 = vlaneseq }
  0x62   : > { %788 = vmatprep.subr.bf16.mxu0 %v2838_v10  ;;  %829 = vmatprep.subr.bf16.mxu1 %v2840_v11  ;;  %v2858_v23 = vld [vmem:[%s3425_s27 + $0xac] ss:$16 sps:$4 sm:$0xff]   ;;  %v2860_v24 = vld [vmem:[%s3425_s27 + $0xa0] ss:$16 sps:$4 sm:$0xff]   ;;  %v2861_v25 = vld [vmem:[%s3425_s27 + $0xa8] ss:$16 sps:$4 sm:$0xff]  }
  0x63   : > { %v2862_v26 = vld [vmem:[%s3425_s27 + $0xc4] ss:$16 sps:$4 sm:$0xff]   ;;  %v2864_v27 = vld [vmem:[%s3425_s27 + $0xcc] ss:$16 sps:$4 sm:$0xff]   ;;  %v2866_v28 = vld [vmem:[%s3425_s27 + $0xc0] ss:$16 sps:$4 sm:$0xff]  }
  0x64   : > { %v2867_v29 = vld [vmem:[%s3425_s27 + $0xc8] ss:$16 sps:$4 sm:$0xff]   ;;  %v2868_v30 = vld [vmem:[%s3425_s27 + $0xe4] ss:$16 sps:$4 sm:$0xff]   ;;  %v2870_v31 = vld [vmem:[%s3425_s27 + $0xec] ss:$16 sps:$4 sm:$0xff]  }
  0x65   : > { %789 = vmatpush1.bf16.msra.mxu0 %v2842_v12  ;;  %830 = vmatpush1.bf16.msra.mxu1 %v2843_v13  ;;  %v2872_v32 = vld [vmem:[%s3425_s27 + $0xe0] ss:$16 sps:$4 sm:$0xff]   ;;  %v2873_v33 = vld [vmem:[%s3425_s27 + $0xe8] ss:$16 sps:$4 sm:$0xff]   ;;  %v2874_v34 = vld [vmem:[%s3425_s27 + $0x104] ss:$16 sps:$4 sm:$0xff]  }
  0x66   : > { %790 = vmatprep.subr.bf16.mxu0 %v2844_v14  ;;  %831 = vmatprep.subr.bf16.mxu1 %v2846_v15  ;;  %v2876_v35 = vld [vmem:[%s3425_s27 + $0x10c] ss:$16 sps:$4 sm:$0xff]   ;;  %v2878_v36 = vld [vmem:[%s3425_s27 + $0x100] ss:$16 sps:$4 sm:$0xff]   ;;  %v2879_v37 = vld [vmem:[%s3425_s27 + $0x108] ss:$16 sps:$4 sm:$0xff]  }
  0x67   : > { %v2880_v38 = vld [vmem:[%s3425_s27 + $0x124] ss:$16 sps:$4 sm:$0xff]   ;;  %v2882_v39 = vld [vmem:[%s3425_s27 + $0x12c] ss:$16 sps:$4 sm:$0xff]   ;;  %v2884_v40 = vld [vmem:[%s3425_s27 + $0x120] ss:$16 sps:$4 sm:$0xff]  }
  0x68   : > { %v2885_v41 = vld [vmem:[%s3425_s27 + $0x128] ss:$16 sps:$4 sm:$0xff]   ;;  %v2886_v42 = vld [vmem:[%s3425_s27 + $0x144] ss:$16 sps:$4 sm:$0xff]   ;;  %v2888_v43 = vld [vmem:[%s3425_s27 + $0x14c] ss:$16 sps:$4 sm:$0xff]  }
  0x69   : > { %791 = vmatpush1.bf16.msra.mxu0 %v2848_v16  ;;  %832 = vmatpush1.bf16.msra.mxu1 %v2849_v17  ;;  %v2890_v44 = vld [vmem:[%s3425_s27 + $0x140] ss:$16 sps:$4 sm:$0xff]   ;;  %v2891_v45 = vld [vmem:[%s3425_s27 + $0x148] ss:$16 sps:$4 sm:$0xff]   ;;  %v2892_v46 = vld [vmem:[%s3425_s27 + $0x164] ss:$16 sps:$4 sm:$0xff]  }
  0x6a   : > { %792 = vmatprep.subr.bf16.mxu0 %v2850_v18  ;;  %833 = vmatprep.subr.bf16.mxu1 %v2852_v19  ;;  %v2894_v47 = vld [vmem:[%s3425_s27 + $0x16c] ss:$16 sps:$4 sm:$0xff]   ;;  %v2407_v48 = vld.sshfl [vmem:[%s3439_s22] sm:$0x33 pattern:$0x76325410] }
  0x6b   : > { %v2896_v49 = vld [vmem:[%s3425_s27 + $0x160] ss:$16 sps:$4 sm:$0xff]   ;;  %v2897_v50 = vld [vmem:[%s3425_s27 + $0x168] ss:$16 sps:$4 sm:$0xff]   ;;  %v395_v51 = vcombine.high %v2407_v48, %v2407_v48  ;;  %v2898_v52 = vld [vmem:[%s3425_s27 + $0x184] ss:$16 sps:$4 sm:$0xff]   ;;  %v398_v5 = vpack.c.bf16 %v2407_v48, %v2407_v48 }
  0x6c   : > { %v2900_v53 = vld [vmem:[%s3425_s27 + $0x18c] ss:$16 sps:$4 sm:$0xff]   ;;  %v2902_v55 = vld [vmem:[%s3425_s27 + $0x180] ss:$16 sps:$4 sm:$0xff]   ;;  %v2903_v56 = vld [vmem:[%s3425_s27 + $0x188] ss:$16 sps:$4 sm:$0xff]  }
  0x6d   : > { %793 = vmatpush1.bf16.msra.mxu0 %v2854_v20  ;;  %834 = vmatpush1.bf16.msra.mxu1 %v2855_v21  ;;  %v399_v54 = vpack.c.bf16 %v395_v51, %v395_v51  ;;  %v2904_v57 = vld [vmem:[%s3425_s27 + $0x1a4] ss:$16 sps:$4 sm:$0xff]   ;;  %v2906_v58 = vld [vmem:[%s3425_s27 + $0x1ac] ss:$16 sps:$4 sm:$0xff]   ;;  %v2908_v59 = vld [vmem:[%s3425_s27 + $0x1a0] ss:$16 sps:$4 sm:$0xff]  }
  0x6e   : > { %794 = vmatprep.subr.bf16.mxu0 %v2856_v22  ;;  %835 = vmatprep.subr.bf16.mxu1 %v2858_v23  ;;  %v2909_v60 = vld [vmem:[%s3425_s27 + $0x1a8] ss:$16 sps:$4 sm:$0xff]   ;;  %v2910_v61 = vld [vmem:[%s3425_s27 + $0x1c4] ss:$16 sps:$4 sm:$0xff]   ;;  %v2912_v62 = vld [vmem:[%s3425_s27 + $0x1cc] ss:$16 sps:$4 sm:$0xff]  }
  0x6f   : > { %816 = vmatprep.mubr.bf16.mxu0 %v399_v54  ;;  %857 = vmatprep.mubr.bf16.mxu1 %v399_v54  ;;  %v2914_v63 = vld [vmem:[%s3425_s27 + $0x1c0] ss:$16 sps:$4 sm:$0xff]   ;;  %v2915_v0 = vld [vmem:[%s3425_s27 + $0x1c8] ss:$16 sps:$4 sm:$0xff]   ;;  %v2916_v1 = vld [vmem:[%s3425_s27 + $0x1e4] ss:$16 sps:$4 sm:$0xff]  }
  0x70   : > { %v2918_v2 = vld [vmem:[%s3425_s27 + $0x1ec] ss:$16 sps:$4 sm:$0xff]   ;;  %v2920_v3 = vld [vmem:[%s3425_s27 + $0x1e0] ss:$16 sps:$4 sm:$0xff]   ;;  %v2921_v4 = vld [vmem:[%s3425_s27 + $0x1e8] ss:$16 sps:$4 sm:$0xff]  }
  0x71   : > { %795 = vmatpush1.bf16.msra.mxu0 %v2860_v24  ;;  %836 = vmatpush1.bf16.msra.mxu1 %v2861_v25  ;;  %v3247_v6 = vmov 1983009808   ;;  %v3508_v10 = vshrl.u32 %v875_v8, 7  ;;  %v385_v24 = vld [vmem:[#allocation2] sm:$0xff]  ;;  %p2472_p4 = scmp.ne.s32.totalorder %s3321_s8, 3 }
  0x72   : > { %796 = vmatprep.subr.bf16.mxu0 %v2862_v26  ;;  %837 = vmatprep.subr.bf16.mxu1 %v2864_v27  ;;  %v873_v7 = vunpack.c.l.s4 %v3247_v6  ;;  %v2922_v27 = vld [vmem:[%s3816_s3 + $0x4] ss:$16 sps:$4 sm:$0xff] (!%p2472_p4)   ;;  %vm993_vm0 = vcmask (!%p2472_p4), 523264   ;;  %v2945_v48 = vld [vmem:[%s3816_s3 + $0x68] ss:$16 sps:$4 sm:$0xff] (!%p2472_p4)   ;;  %vm1113_vm1 = vcmask (!%p2472_p4), 1041408  }
  0x73   : > { %v2960_v51 = vld [vmem:[#allocation6 + $0x44] ss:$16 sps:$4 sm:$0xff] (!%p2472_p4)   ;;  %v2958_v54 = vld [vmem:[#allocation6 + $0x40] ss:$16 sps:$4 sm:$0xff] (!%p2472_p4)   ;;  %v2979_v8 = vld [vmem:[#allocation6 + $0xa8] ss:$16 sps:$4 sm:$0xff] (!%p2472_p4)  }
  0x74   : > { %v874_v9 = vunpack.c.0.s8 %v873_v7  ;;  %v2982_v6 = vld [vmem:[#allocation6 + $0xc0] ss:$16 sps:$4 sm:$0xff] (!%p2472_p4)   ;;  %v2990_v7 = vld [vmem:[#allocation6 + $0xe4] ss:$16 sps:$4 sm:$0xff] (!%p2472_p4)   ;;  %vm2330_vm2 = vcmask (!%p2472_p4), 3072  }
  0x75   : > { %797 = vmatpush1.bf16.msra.mxu0 %v2866_v28  ;;  %838 = vmatpush1.bf16.msra.mxu1 %v2867_v29  ;;  %v2924_v28 = vld [vmem:[%s3816_s3] ss:$16 sps:$4 sm:$0xff] (!%p2472_p4)   ;;  %v3248_v29 = vmov (!%p2472_p4), 0  }
  0x76   : > { %798 = vmatprep.subr.bf16.mxu0 %v2868_v30  ;;  %839 = vmatprep.subr.bf16.mxu1 %v2870_v31  ;;  %v3511_v13 = vsub.s32 %v874_v9, %v3508_v10  ;;  %v2925_v30 = vld [vmem:[%s3816_s3 + $0x24] ss:$16 sps:$4 sm:$0xff] (!%p2472_p4)   ;;  %v2927_v31 = vld [vmem:[%s3816_s3 + $0x20] ss:$16 sps:$4 sm:$0xff] (!%p2472_p4)  }
  0x77   : > { %v2987_v9 = vld [vmem:[#allocation6 + $0xcc] ss:$16 sps:$4 sm:$0xff] (!%p2472_p4)  }
  0x79   : > { %799 = vmatpush1.bf16.msra.mxu0 %v2872_v32  ;;  %840 = vmatpush1.bf16.msra.mxu1 %v2873_v33  ;;  %v2928_v32 = vld [vmem:[%s3816_s3 + $0x44] ss:$16 sps:$4 sm:$0xff] (!%p2472_p4)   ;;  %v2930_v33 = vld [vmem:[%s3816_s3 + $0x40] ss:$16 sps:$4 sm:$0xff] (!%p2472_p4)  }
  0x7a   : > { %800 = vmatprep.subr.bf16.mxu0 %v2874_v34  ;;  %841 = vmatprep.subr.bf16.mxu1 %v2876_v35  ;;  %v2934_v34 = vld [vmem:[%s3816_s3 + $0xc] ss:$16 sps:$4 sm:$0xff] (!%p2472_p4)   ;;  %v2936_v35 = vld [vmem:[%s3816_s3 + $0x8] ss:$16 sps:$4 sm:$0xff] (!%p2472_p4)  }
  0x7d   : > { %801 = vmatpush1.bf16.msra.mxu0 %v2878_v36  ;;  %842 = vmatpush1.bf16.msra.mxu1 %v2879_v37  ;;  %v2937_v36 = vld [vmem:[%s3816_s3 + $0x2c] ss:$16 sps:$4 sm:$0xff] (!%p2472_p4)   ;;  %v2931_v37 = vld [vmem:[%s3816_s3 + $0x64] ss:$16 sps:$4 sm:$0xff] (!%p2472_p4)  }
  0x7e   : > { %802 = vmatprep.subr.bf16.mxu0 %v2880_v38  ;;  %843 = vmatprep.subr.bf16.mxu1 %v2882_v39  ;;  %v2939_v38 = vld [vmem:[%s3816_s3 + $0x28] ss:$16 sps:$4 sm:$0xff] (!%p2472_p4)   ;;  %v2933_v39 = vld [vmem:[%s3816_s3 + $0x60] ss:$16 sps:$4 sm:$0xff] (!%p2472_p4)  }
  0x81   : > { %803 = vmatpush1.bf16.msra.mxu0 %v2884_v40  ;;  %844 = vmatpush1.bf16.msra.mxu1 %v2885_v41  ;;  %v2940_v40 = vld [vmem:[%s3816_s3 + $0x4c] ss:$16 sps:$4 sm:$0xff] (!%p2472_p4)   ;;  %v895_v41 = vld [vmem:[%s3815_s2] sm:$0xf] (!%p2472_p4) }
  0x82   : > { %804 = vmatprep.subr.bf16.mxu0 %v2886_v42  ;;  %845 = vmatprep.subr.bf16.mxu1 %v2888_v43  ;;  %v2948_v42 = vld [vmem:[#allocation6 + $0x4] ss:$16 sps:$4 sm:$0xff] (!%p2472_p4)   ;;  %v2942_v43 = vld [vmem:[%s3816_s3 + $0x48] ss:$16 sps:$4 sm:$0xff] (!%p2472_p4)  }
  0x85   : > { %805 = vmatpush1.bf16.msra.mxu0 %v2890_v44  ;;  %846 = vmatpush1.bf16.msra.mxu1 %v2891_v45  ;;  %v896_v44 = vpack.c.bf16 (!%p2472_p4), %v895_v41, %v895_v41  ;;  %v2943_v45 = vld [vmem:[%s3816_s3 + $0x6c] ss:$16 sps:$4 sm:$0xff] (!%p2472_p4)  }
  0x86   : > { %806 = vmatprep.subr.bf16.mxu0 %v2892_v46  ;;  %847 = vmatprep.subr.bf16.mxu1 %v2894_v47  ;;  %v2946_v46 = vld [vmem:[#allocation6] ss:$16 sps:$4 sm:$0xff] (!%p2472_p4)   ;;  %v2954_v47 = vld [vmem:[#allocation6 + $0x24] ss:$16 sps:$4 sm:$0xff] (!%p2472_p4)  }
  0x87   : > { %v3031_v41 = vld [vmem:[#allocation6 + $0x1c0] ss:$16 sps:$4 sm:$0xff] (!%p2472_p4)  }
  0x89   : > { %807 = vmatpush1.bf16.msra.mxu0 %v2896_v49  ;;  %848 = vmatpush1.bf16.msra.mxu1 %v2897_v50  ;;  %v2951_v49 = vld [vmem:[#allocation6 + $0xc] ss:$16 sps:$4 sm:$0xff] (!%p2472_p4)   ;;  %v2952_v50 = vld [vmem:[#allocation6 + $0x20] ss:$16 sps:$4 sm:$0xff] (!%p2472_p4)  }
  0x8a   : > { %808 = vmatprep.subr.bf16.mxu0 %v2898_v52  ;;  %849 = vmatprep.subr.bf16.mxu1 %v2900_v53  ;;  %v2949_v52 = vld [vmem:[#allocation6 + $0x8] ss:$16 sps:$4 sm:$0xff] (!%p2472_p4)   ;;  %v2957_v53 = vld [vmem:[#allocation6 + $0x2c] ss:$16 sps:$4 sm:$0xff] (!%p2472_p4)  }
  0x8d   : > { %809 = vmatpush1.bf16.msra.mxu0 %v2902_v55  ;;  %850 = vmatpush1.bf16.msra.mxu1 %v2903_v56  ;;  %v2966_v55 = vld [vmem:[#allocation6 + $0x64] ss:$16 sps:$4 sm:$0xff] (!%p2472_p4)   ;;  %v2955_v56 = vld [vmem:[#allocation6 + $0x28] ss:$16 sps:$4 sm:$0xff] (!%p2472_p4)  }
  0x8e   : > { %810 = vmatprep.subr.bf16.mxu0 %v2904_v57  ;;  %851 = vmatprep.subr.bf16.mxu1 %v2906_v58  ;;  %v2963_v57 = vld [vmem:[#allocation6 + $0x4c] ss:$16 sps:$4 sm:$0xff] (!%p2472_p4)   ;;  %v2964_v58 = vld [vmem:[#allocation6 + $0x60] ss:$16 sps:$4 sm:$0xff] (!%p2472_p4)  }
  0x91   : > { %811 = vmatpush1.bf16.msra.mxu0 %v2908_v59  ;;  %852 = vmatpush1.bf16.msra.mxu1 %v2909_v60  ;;  %v2972_v59 = vld [vmem:[#allocation6 + $0x84] ss:$16 sps:$4 sm:$0xff] (!%p2472_p4)   ;;  %v2961_v60 = vld [vmem:[#allocation6 + $0x48] ss:$16 sps:$4 sm:$0xff] (!%p2472_p4)  }
  0x92   : > { %812 = vmatprep.subr.bf16.mxu0 %v2910_v61  ;;  %853 = vmatprep.subr.bf16.mxu1 %v2912_v62  ;;  %v2969_v61 = vld [vmem:[#allocation6 + $0x6c] ss:$16 sps:$4 sm:$0xff] (!%p2472_p4)   ;;  %v2970_v62 = vld [vmem:[#allocation6 + $0x80] ss:$16 sps:$4 sm:$0xff] (!%p2472_p4)  }
  0x95   : > { %813 = vmatpush1.bf16.msra.mxu0 %v2914_v63  ;;  %854 = vmatpush1.bf16.msra.mxu1 %v2915_v0  ;;  %v2978_v63 = vld [vmem:[#allocation6 + $0xa4] ss:$16 sps:$4 sm:$0xff] (!%p2472_p4)   ;;  %v2967_v0 = vld [vmem:[#allocation6 + $0x68] ss:$16 sps:$4 sm:$0xff] (!%p2472_p4)  }
  0x96   : > { %814 = vmatprep.subr.bf16.mxu0 %v2916_v1  ;;  %855 = vmatprep.subr.bf16.mxu1 %v2918_v2  ;;  %v2975_v1 = vld [vmem:[#allocation6 + $0x8c] ss:$16 sps:$4 sm:$0xff] (!%p2472_p4)   ;;  %v2976_v2 = vld [vmem:[#allocation6 + $0xa0] ss:$16 sps:$4 sm:$0xff] (!%p2472_p4)  }
  0x99   : > { %815 = vmatpush1.bf16.msra.mxu0 %v2920_v3  ;;  %856 = vmatpush1.bf16.msra.mxu1 %v2921_v4  ;;  %v2984_v3 = vld [vmem:[#allocation6 + $0xc4] ss:$16 sps:$4 sm:$0xff] (!%p2472_p4)   ;;  %v2973_v4 = vld [vmem:[#allocation6 + $0x88] ss:$16 sps:$4 sm:$0xff] (!%p2472_p4)  }
  0x9a   : > { %997 = vmatprep.subr.bf16.mxu0 (!%p2472_p4), %v2922_v27  ;;  %1038 = vmatprep.subr.bf16.mxu1 (!%p2472_p4), %v2934_v34  ;;  %v3011_v27 = vld [vmem:[#allocation6 + $0x14c] ss:$16 sps:$4 sm:$0xff] (!%p2472_p4)   ;;  %v3015_v34 = vld [vmem:[#allocation6 + $0x168] ss:$16 sps:$4 sm:$0xff] (!%p2472_p4)  }
  0x9c   : > { %817 = vmatmul.mubr.bf16.vlgmr.msra.gmra.mrb[0].mxu0 %v398_v5  ;;  %858 = vmatmul.mubr.bf16.vlgmr.msra.gmra.mrb[0].mxu1 %v398_v5  ;;  %v2981_v5 = vld [vmem:[#allocation6 + $0xac] ss:$16 sps:$4 sm:$0xff] (!%p2472_p4)  }
  0x9d   : > { %1029 = vmatprep.mubr.bf16.mxu0 (!%p2472_p4), %v3248_v29  ;;  %1070 = vmatprep.mubr.bf16.mxu1 (!%p2472_p4), %v3248_v29  ;;  %v3020_v29 = vld [vmem:[#allocation6 + $0x184] ss:$16 sps:$4 sm:$0xff] (!%p2472_p4)  }
  0x9e   : > { %998 = vmatpush1.bf16.msra.mxu0 (!%p2472_p4), %v2924_v28  ;;  %1039 = vmatpush1.bf16.msra.mxu1 (!%p2472_p4), %v2936_v35  ;;  %v3012_v28 = vld [vmem:[#allocation6 + $0x160] ss:$16 sps:$4 sm:$0xff] (!%p2472_p4)   ;;  %v3023_v35 = vld [vmem:[#allocation6 + $0x18c] ss:$16 sps:$4 sm:$0xff] (!%p2472_p4)  }
  0x9f   : > { %999 = vmatprep.subr.bf16.mxu0 (!%p2472_p4), %v2925_v30  ;;  %1040 = vmatprep.subr.bf16.mxu1 (!%p2472_p4), %v2937_v36  ;;  %v3009_v30 = vld [vmem:[#allocation6 + $0x148] ss:$16 sps:$4 sm:$0xff] (!%p2472_p4)   ;;  %v3024_v36 = vld [vmem:[#allocation6 + $0x1a0] ss:$16 sps:$4 sm:$0xff] (!%p2472_p4)  }
  0xa2   : > { %1000 = vmatpush1.bf16.msra.mxu0 (!%p2472_p4), %v2927_v31  ;;  %1041 = vmatpush1.bf16.msra.mxu1 (!%p2472_p4), %v2939_v38  ;;  %v3017_v31 = vld [vmem:[#allocation6 + $0x16c] ss:$16 sps:$4 sm:$0xff] (!%p2472_p4)  }
  0xa3   : > { %1001 = vmatprep.subr.bf16.mxu0 (!%p2472_p4), %v2928_v32  ;;  %1042 = vmatprep.subr.bf16.mxu1 (!%p2472_p4), %v2940_v40  ;;  %v3018_v32 = vld [vmem:[#allocation6 + $0x180] ss:$16 sps:$4 sm:$0xff] (!%p2472_p4)   ;;  %v3029_v38 = vld [vmem:[#allocation6 + $0x1ac] ss:$16 sps:$4 sm:$0xff] (!%p2472_p4)   ;;  %v3033_v40 = vld [vmem:[#allocation6 + $0x1c4] ss:$16 sps:$4 sm:$0xff] (!%p2472_p4)  }
  0xa6   : > { %1002 = vmatpush1.bf16.msra.mxu0 (!%p2472_p4), %v2930_v33  ;;  %1043 = vmatpush1.bf16.msra.mxu1 (!%p2472_p4), %v2942_v43  ;;  %v3026_v33 = vld [vmem:[#allocation6 + $0x1a4] ss:$16 sps:$4 sm:$0xff] (!%p2472_p4)   ;;  %v3036_v43 = vld [vmem:[#allocation6 + $0x1cc] ss:$16 sps:$4 sm:$0xff] (!%p2472_p4)  }
  0xa7   : > { %1003 = vmatprep.subr.bf16.mxu0 (!%p2472_p4), %v2931_v37  ;;  %1044 = vmatprep.subr.bf16.mxu1 (!%p2472_p4), %v2943_v45  ;;  %v3021_v37 = vld [vmem:[#allocation6 + $0x188] ss:$16 sps:$4 sm:$0xff] (!%p2472_p4)   ;;  %v3042_v45 = vld [vmem:[#allocation6 + $0x1ec] ss:$16 sps:$4 sm:$0xff] (!%p2472_p4)  }
  0xaa   : > { %1004 = vmatpush1.bf16.msra.mxu0 (!%p2472_p4), %v2933_v39  ;;  %1045 = vmatpush1.bf16.msra.mxu1 (!%p2472_p4), %v2945_v48  ;;  %v3027_v39 = vld [vmem:[#allocation6 + $0x1a8] ss:$16 sps:$4 sm:$0xff] (!%p2472_p4)   ;;  %v3045_v48 = vld [vmem:[#allocation6 + $0x204] ss:$16 sps:$4 sm:$0xff] (!%p2472_p4)  }
  0xab   : > { %1945 = vmatprep.subr.bf16.mxu0 (!%p2472_p4), %v2948_v42  ;;  %2027 = vmatprep.subr.bf16.mxu1 (!%p2472_p4), %v2951_v49  ;;  %v3034_v42 = vld [vmem:[#allocation6 + $0x1c8] ss:$16 sps:$4 sm:$0xff] (!%p2472_p4)   ;;  %v3048_v49 = vld [vmem:[#allocation6 + $0x20c] ss:$16 sps:$4 sm:$0xff] (!%p2472_p4)  }
 0x16f   : > { %v818_v11 = vpop.f32.mrb[0].mxu0  ;;  %v859_v12 = vpop.f32.mrb[0].mxu1 }
 0x170   : > { %v820_v14 = vpop.f32.mrb[1].mxu0  ;;  %v861_v15 = vpop.f32.mrb[1].mxu1 }
 0x171   : > { %v870_v16 = vcombine.low %v818_v11, %v820_v14  ;;  %v871_v17 = vcombine.low %v859_v12, %v861_v15  ;;  %v822_v18 = vpop.f32.mrb[2].mxu0  ;;  %v863_v19 = vpop.f32.mrb[2].mxu1  ;;  %v2988_v11 = vld [vmem:[#allocation6 + $0xe0] ss:$16 sps:$4 sm:$0xff] (!%p2472_p4)   ;;  %v2996_v12 = vld [vmem:[#allocation6 + $0x104] ss:$16 sps:$4 sm:$0xff] (!%p2472_p4)  }
 0x172   : > { %v823_v20 = vpop.f32.mrb[3].mxu0  ;;  %v864_v21 = vpop.f32.mrb[3].mxu1  ;;  %2489 = vmatmul.mubr.msk.bf16.vlgmr.msra.gmra.mrb[0].mxu0 (!%p2472_p4), %vm993_vm0, %v896_v44  ;;  %2490 = vmatmul.mubr.msk.bf16.vlgmr.msra.gmra.mrb[0].mxu1 (!%p2472_p4), %vm993_vm0, %v896_v44  ;;  %v2985_v14 = vld [vmem:[#allocation6 + $0xc8] ss:$16 sps:$4 sm:$0xff] (!%p2472_p4)   ;;  %v2993_v15 = vld [vmem:[#allocation6 + $0xec] ss:$16 sps:$4 sm:$0xff] (!%p2472_p4)  }
 0x173   : > { %v878_v22 = vrot.slane %v870_v16, %v3511_v13  ;;  %v885_v23 = vrot.slane %v871_v17, %v3511_v13  ;;  %893 = sbr.rel (%p2472_p4) target bundleno = 1120 (0x460), region = 72  ;;  %1946 = vmatpush1.bf16.msra.mxu0 (!%p2472_p4), %v2946_v46  ;;  %2028 = vmatpush1.bf16.msra.mxu1 (!%p2472_p4), %v2949_v52  ;;  %v2991_v16 = vld [vmem:[#allocation6 + $0xe8] ss:$16 sps:$4 sm:$0xff] (!%p2472_p4)   ;;  %v2994_v17 = vld [vmem:[#allocation6 + $0x100] ss:$16 sps:$4 sm:$0xff] (!%p2472_p4)  }
 0x174   : > { %1947 = vmatprep.subr.bf16.mxu0 (!%p2472_p4), %v2954_v47  ;;  %2029 = vmatprep.subr.bf16.mxu1 (!%p2472_p4), %v2957_v53  ;;  %v2999_v18 = vld [vmem:[#allocation6 + $0x10c] ss:$16 sps:$4 sm:$0xff] (!%p2472_p4)   ;;  %v3002_v19 = vld [vmem:[#allocation6 + $0x124] ss:$16 sps:$4 sm:$0xff] (!%p2472_p4)   ;;  %v3000_v20 = vld [vmem:[#allocation6 + $0x120] ss:$16 sps:$4 sm:$0xff] (!%p2472_p4)  }
 0x175   : > { %v886_v25 = vcombine.low %v878_v22, %v885_v23  ;;  %v3008_v21 = vld [vmem:[#allocation6 + $0x144] ss:$16 sps:$4 sm:$0xff] (!%p2472_p4)   ;;  %v2997_v22 = vld [vmem:[#allocation6 + $0x108] ss:$16 sps:$4 sm:$0xff] (!%p2472_p4)   ;;  %v3005_v23 = vld [vmem:[#allocation6 + $0x12c] ss:$16 sps:$4 sm:$0xff] (!%p2472_p4)  }
 0x176   : > { %v3039_v44 = vld [vmem:[#allocation6 + $0x1e4] ss:$16 sps:$4 sm:$0xff] (!%p2472_p4)   ;;  %v3037_v46 = vld [vmem:[#allocation6 + $0x1e0] ss:$16 sps:$4 sm:$0xff] (!%p2472_p4)   ;;  %v3040_v47 = vld [vmem:[#allocation6 + $0x1e8] ss:$16 sps:$4 sm:$0xff] (!%p2472_p4)  }
 0x177   : > { %v888_v26 = vadd.f32 %v886_v25, %v385_v24  ;;  %1948 = vmatpush1.bf16.msra.mxu0 (!%p2472_p4), %v2952_v50  ;;  %2030 = vmatpush1.bf16.msra.mxu1 (!%p2472_p4), %v2955_v56  ;;  %v3006_v24 = vld [vmem:[#allocation6 + $0x140] ss:$16 sps:$4 sm:$0xff] (!%p2472_p4)   ;;  %v3014_v25 = vld [vmem:[#allocation6 + $0x164] ss:$16 sps:$4 sm:$0xff] (!%p2472_p4)  }
 0x178   : > { %1949 = vmatprep.subr.bf16.mxu0 (!%p2472_p4), %v2960_v51  ;;  %2031 = vmatprep.subr.bf16.mxu1 (!%p2472_p4), %v2963_v57  ;;  %v1125_v57 = vsub.s32 (!%p2472_p4), 0, %v3508_v10 }
 0x179   : > { %889 = vst [vmem:[#allocation2] sm:$0xff] %v888_v26  ;;  %v3003_v26 = vld [vmem:[#allocation6 + $0x128] ss:$16 sps:$4 sm:$0xff] (!%p2472_p4)  }
 0x17b   : > { %1950 = vmatpush1.bf16.msra.mxu0 %v2958_v54  ;;  %2032 = vmatpush1.bf16.msra.mxu1 %v2961_v60  ;;  %v1079_v60 = vld [vmem:[%s3817_s4] sm:$0xf] }
 0x17c   : > { %1951 = vmatprep.subr.bf16.mxu0 %v2966_v55  ;;  %2033 = vmatprep.subr.bf16.mxu1 %v2969_v61  ;;  %v1129_v61 = vsub.s32 1, %v3508_v10 }
 0x17f   : > { %1952 = vmatpush1.bf16.msra.mxu0 %v2964_v58  ;;  %2034 = vmatpush1.bf16.msra.mxu1 %v2967_v0 }
 0x180   : > { %1953 = vmatprep.subr.bf16.mxu0 %v2972_v59  ;;  %2035 = vmatprep.subr.bf16.mxu1 %v2975_v1  ;;  %v894_v50 = vld [vmem:[#allocation2] sm:$0xff] }
 0x181   : > { %v1081_v51 = vcombine.high %v894_v50, %v894_v50  ;;  %v1088_v52 = vrot.slane %v894_v50, %v3511_v13  ;;  %v1102_v55 = vcombine.low %v894_v50, %v894_v50  ;;  %v3078_v50 = vld [vmem:[#allocation6 + $0x2ac] ss:$16 sps:$4 sm:$0xff]  }
 0x183   : > { %1954 = vmatpush1.bf16.msra.mxu0 %v2970_v62  ;;  %2036 = vmatpush1.bf16.msra.mxu1 %v2973_v4  ;;  %v1095_v53 = vrot.slane %v1081_v51, %v3511_v13  ;;  %v1109_v56 = vrot.slane %v1102_v55, %v3511_v13  ;;  %v1096_v58 = vcombine.high %v1088_v52, %v1088_v52  ;;  %v1133_v4 = vsub.s32 2, %v3508_v10  ;;  %v3073_v51 = vld [vmem:[#allocation6 + $0x2a0] ss:$16 sps:$4 sm:$0xff]  }
 0x184   : > { %1955 = vmatprep.subr.bf16.mxu0 %v2978_v63  ;;  %2037 = vmatprep.subr.bf16.mxu1 %v2981_v5  ;;  %v1126_v63 = vrot.slane %v1079_v60, %v1125_v57  ;;  %v1130_v13 = vrot.slane %v1079_v60, %v1129_v61  ;;  %v3079_v55 = vld [vmem:[#allocation6 + $0x2c0] ss:$16 sps:$4 sm:$0xff]  }
 0x185   : > { %v1116_v54 = vsel %vm1113_vm1, %v1095_v53, %v1088_v52  ;;  %v1110_v59 = vcombine.high %v1109_v56, %v1109_v56  ;;  %v1114_v62 = vsel %vm1113_vm1, %v1088_v52, %v1109_v56  ;;  %v1097_v5 = vcombine.high %v1095_v53, %v1095_v53  ;;  %v3076_v52 = vld [vmem:[#allocation6 + $0x2a8] ss:$16 sps:$4 sm:$0xff]   ;;  %v3081_v53 = vld [vmem:[#allocation6 + $0x2c4] ss:$16 sps:$4 sm:$0xff]  }
 0x186   : > { %v3082_v56 = vld [vmem:[#allocation6 + $0x2c8] ss:$16 sps:$4 sm:$0xff]  }
 0x187   : > { %1956 = vmatpush1.bf16.msra.mxu0 %v2976_v2  ;;  %2038 = vmatpush1.bf16.msra.mxu1 %v2979_v8  ;;  %v1115_v0 = vsel %vm1113_vm1, %v1096_v58, %v1110_v59  ;;  %v1137_v8 = vsub.s32 3, %v3508_v10  ;;  %v3090_v59 = vld [vmem:[#allocation6 + $0x2ec] ss:$16 sps:$4 sm:$0xff]  }
 0x188   : > { %1957 = vmatprep.subr.bf16.mxu0 %v2984_v3  ;;  %2039 = vmatprep.subr.bf16.mxu1 %v2987_v9 }
 0x18b   : > { %1958 = vmatpush1.bf16.msra.mxu0 %v2982_v6  ;;  %2040 = vmatpush1.bf16.msra.mxu1 %v2985_v14 }
 0x18c   : > { %1959 = vmatprep.subr.bf16.mxu0 %v2990_v7  ;;  %2041 = vmatprep.subr.bf16.mxu1 %v2993_v15  ;;  %v1134_v15 = vrot.slane %v1079_v60, %v1133_v4 }
 0x18f   : > { %1960 = vmatpush1.bf16.msra.mxu0 %v2988_v11  ;;  %2042 = vmatpush1.bf16.msra.mxu1 %v2991_v16  ;;  %v1117_v16 = vsel %vm1113_vm1, %v1097_v5, %v1096_v58  ;;  %v3087_v58 = vld [vmem:[#allocation6 + $0x2e4] ss:$16 sps:$4 sm:$0xff]   ;;  %v3097_v5 = vld [vmem:[#allocation6 + $0x320] ss:$16 sps:$4 sm:$0xff]  }
 0x190   : > { %1961 = vmatprep.subr.bf16.mxu0 %v2996_v12  ;;  %2043 = vmatprep.subr.bf16.mxu1 %v2999_v18 }
 0x193   : > { %1962 = vmatpush1.bf16.msra.mxu0 %v2994_v17  ;;  %2044 = vmatpush1.bf16.msra.mxu1 %v2997_v22 }
 0x194   : > { %1963 = vmatprep.subr.bf16.mxu0 %v3002_v19  ;;  %2045 = vmatprep.subr.bf16.mxu1 %v3005_v23  ;;  %v1138_v19 = vrot.slane %v1079_v60, %v1137_v8  ;;  %v3043_v23 = vld [vmem:[#allocation6 + $0x200] ss:$16 sps:$4 sm:$0xff]  }
 0x195   : > { %v3085_v60 = vld [vmem:[#allocation6 + $0x2e0] ss:$16 sps:$4 sm:$0xff]  }
 0x197   : > { %1964 = vmatpush1.bf16.msra.mxu0 %v3000_v20  ;;  %2046 = vmatpush1.bf16.msra.mxu1 %v3003_v26 }
 0x198   : > { %1965 = vmatprep.subr.bf16.mxu0 %v3008_v21  ;;  %2047 = vmatprep.subr.bf16.mxu1 %v3011_v27 }
 0x19b   : > { %1966 = vmatpush1.bf16.msra.mxu0 %v3006_v24  ;;  %2048 = vmatpush1.bf16.msra.mxu1 %v3009_v30  ;;  %v3046_v24 = vld [vmem:[#allocation6 + $0x208] ss:$16 sps:$4 sm:$0xff]  }
 0x19c   : > { %1967 = vmatprep.subr.bf16.mxu0 %v3014_v25  ;;  %2049 = vmatprep.subr.bf16.mxu1 %v3017_v31 }
 0x19f   : > { %1968 = vmatpush1.bf16.msra.mxu0 %v3012_v28  ;;  %2050 = vmatpush1.bf16.msra.mxu1 %v3015_v34  ;;  %v3051_v28 = vld [vmem:[#allocation6 + $0x224] ss:$16 sps:$4 sm:$0xff]   ;;  %v3052_v34 = vld [vmem:[#allocation6 + $0x228] ss:$16 sps:$4 sm:$0xff]  }
 0x1a0   : > { %1969 = vmatprep.subr.bf16.mxu0 %v3020_v29  ;;  %2051 = vmatprep.subr.bf16.mxu1 %v3023_v35  ;;  %v3054_v29 = vld [vmem:[#allocation6 + $0x22c] ss:$16 sps:$4 sm:$0xff]  }
 0x1a3   : > { %1970 = vmatpush1.bf16.msra.mxu0 %v3018_v32  ;;  %2052 = vmatpush1.bf16.msra.mxu1 %v3021_v37  ;;  %v3060_v37 = vld [vmem:[#allocation6 + $0x24c] ss:$16 sps:$4 sm:$0xff]  }
 0x1a4   : > { %1971 = vmatprep.subr.bf16.mxu0 %v3026_v33  ;;  %2053 = vmatprep.subr.bf16.mxu1 %v3029_v38  ;;  %v3049_v33 = vld [vmem:[#allocation6 + $0x220] ss:$16 sps:$4 sm:$0xff]  }
 0x1a7   : > { %1972 = vmatpush1.bf16.msra.mxu0 %v3024_v36  ;;  %2054 = vmatpush1.bf16.msra.mxu1 %v3027_v39  ;;  %v3057_v36 = vld [vmem:[#allocation6 + $0x244] ss:$16 sps:$4 sm:$0xff]   ;;  %v3055_v39 = vld [vmem:[#allocation6 + $0x240] ss:$16 sps:$4 sm:$0xff]  }
 0x1a8   : > { %1973 = vmatprep.subr.bf16.mxu0 %v3033_v40  ;;  %2055 = vmatprep.subr.bf16.mxu1 %v3036_v43  ;;  %v3058_v40 = vld [vmem:[#allocation6 + $0x248] ss:$16 sps:$4 sm:$0xff]   ;;  %v3061_v43 = vld [vmem:[#allocation6 + $0x260] ss:$16 sps:$4 sm:$0xff]  }
 0x1ab   : > { %1974 = vmatpush1.bf16.msra.mxu0 %v3031_v41  ;;  %2056 = vmatpush1.bf16.msra.mxu1 %v3034_v42  ;;  %v3063_v41 = vld [vmem:[#allocation6 + $0x264] ss:$16 sps:$4 sm:$0xff]   ;;  %v3066_v42 = vld [vmem:[#allocation6 + $0x26c] ss:$16 sps:$4 sm:$0xff]  }
 0x1ac   : > { %1975 = vmatprep.subr.bf16.mxu0 %v3039_v44  ;;  %2057 = vmatprep.subr.bf16.mxu1 %v3042_v45  ;;  %v3064_v44 = vld [vmem:[#allocation6 + $0x268] ss:$16 sps:$4 sm:$0xff]   ;;  %v3069_v45 = vld [vmem:[#allocation6 + $0x284] ss:$16 sps:$4 sm:$0xff]  }
 0x1af   : > { %1976 = vmatpush1.bf16.msra.mxu0 %v3037_v46  ;;  %2058 = vmatpush1.bf16.msra.mxu1 %v3040_v47  ;;  %v3072_v46 = vld [vmem:[#allocation6 + $0x28c] ss:$16 sps:$4 sm:$0xff]   ;;  %v3067_v47 = vld [vmem:[#allocation6 + $0x280] ss:$16 sps:$4 sm:$0xff]  }
 0x1b0   : > { %1986 = vmatprep.subr.bf16.mxu0 %v3045_v48  ;;  %2068 = vmatprep.subr.bf16.mxu1 %v3048_v49  ;;  %v3070_v48 = vld [vmem:[#allocation6 + $0x288] ss:$16 sps:$4 sm:$0xff]   ;;  %v3075_v49 = vld [vmem:[#allocation6 + $0x2a4] ss:$16 sps:$4 sm:$0xff]  }
 0x245   : > { %v1031_v1 = vpop.f32.mrb[0].mxu0  ;;  %v1072_v18 = vpop.f32.mrb[0].mxu1 }
 0x246   : > { %v1118_v2 = vadd.f32 %v1114_v62, %v1031_v1  ;;  %v1033_v3 = vpop.f32.mrb[1].mxu0  ;;  %v1120_v20 = vadd.f32 %v1116_v54, %v1072_v18  ;;  %v1074_v21 = vpop.f32.mrb[1].mxu1  ;;  %v3084_v54 = vld [vmem:[#allocation6 + $0x2cc] ss:$16 sps:$4 sm:$0xff]   ;;  %v3088_v62 = vld [vmem:[#allocation6 + $0x2e8] ss:$16 sps:$4 sm:$0xff]  }
 0x247   : > { %v1119_v6 = vadd.f32 %v1115_v0, %v1033_v3  ;;  %v1035_v7 = vpop.f32.mrb[2].mxu0  ;;  %v1121_v25 = vadd.f32 %v1117_v16, %v1074_v21  ;;  %v1076_v26 = vpop.f32.mrb[2].mxu1  ;;  %v3096_v0 = vld [vmem:[#allocation6 + $0x30c] ss:$16 sps:$4 sm:$0xff]   ;;  %v3091_v1 = vld [vmem:[#allocation6 + $0x300] ss:$16 sps:$4 sm:$0xff]  }
 0x248   : > { %v1143_v9 = vadd.f32 %v1126_v63, %v1118_v2  ;;  %v1036_v11 = vpop.f32.mrb[3].mxu0  ;;  %v3591_v30 = vadd.f32 %v1134_v15, %v1120_v20  ;;  %v1077_v31 = vpop.f32.mrb[3].mxu1  ;;  %v3093_v63 = vld [vmem:[#allocation6 + $0x304] ss:$16 sps:$4 sm:$0xff]   ;;  %v3102_v3 = vld [vmem:[#allocation6 + $0x32c] ss:$16 sps:$4 sm:$0xff]  }
 0x249   : > { %v1144_v12 = vadd.f32 %v1130_v13, %v1119_v6  ;;  %v1146_v32 = vadd.f32 %v1138_v19, %v1121_v25  ;;  %v3094_v13 = vld [vmem:[#allocation6 + $0x308] ss:$16 sps:$4 sm:$0xff]   ;;  %v3099_v2 = vld [vmem:[#allocation6 + $0x324] ss:$16 sps:$4 sm:$0xff]   ;;  %v3103_v11 = vld [vmem:[#allocation6 + $0x340] ss:$16 sps:$4 sm:$0xff]  }
 0x24a   : > { %v1147_v14 = vmax.f32 %v1143_v9, 0.0  ;;  %v3100_v6 = vld [vmem:[#allocation6 + $0x328] ss:$16 sps:$4 sm:$0xff]   ;;  %v3105_v7 = vld [vmem:[#allocation6 + $0x344] ss:$16 sps:$4 sm:$0xff]  }
 0x24b   : > { %v1148_v17 = vmax.f32 %v1144_v12, 0.0  ;;  %v1150_v35 = vmax.f32 %v1146_v32, 0.0  ;;  %v3108_v9 = vld [vmem:[#allocation6 + $0x34c] ss:$16 sps:$4 sm:$0xff]   ;;  %v3106_v12 = vld [vmem:[#allocation6 + $0x348] ss:$16 sps:$4 sm:$0xff]  }
 0x24c   : > { %v1151_v27 = vpack.c.bf16 %v1147_v14, %v1147_v14  ;;  %v3111_v14 = vld [vmem:[#allocation6 + $0x364] ss:$16 sps:$4 sm:$0xff]   ;;  %v3114_v15 = vld [vmem:[#allocation6 + $0x36c] ss:$16 sps:$4 sm:$0xff]   ;;  %v3109_v16 = vld [vmem:[#allocation6 + $0x360] ss:$16 sps:$4 sm:$0xff]  }
 0x24d   : > { %v1152_v22 = vpack.c.bf16 %v1148_v17, %v1148_v17  ;;  %v1154_v38 = vpack.c.bf16 %v1150_v35, %v1150_v35  ;;  %v3112_v17 = vld [vmem:[#allocation6 + $0x368] ss:$16 sps:$4 sm:$0xff]   ;;  %v3117_v18 = vld [vmem:[#allocation6 + $0x384] ss:$16 sps:$4 sm:$0xff]   ;;  %v3120_v19 = vld [vmem:[#allocation6 + $0x38c] ss:$16 sps:$4 sm:$0xff]  }
 0x24e   : > { %v3115_v20 = vld [vmem:[#allocation6 + $0x380] ss:$16 sps:$4 sm:$0xff]   ;;  %v3118_v21 = vld [vmem:[#allocation6 + $0x388] ss:$16 sps:$4 sm:$0xff]   ;;  %v3130_v26 = vld [vmem:[#allocation6 + $0x3c4] ss:$16 sps:$4 sm:$0xff]  }
 0x24f   : > { %1977 = vmatprep.mubr.bf16.mxu0 %v1152_v22  ;;  %2059 = vmatprep.mubr.bf16.mxu1 %v1152_v22  ;;  %v3124_v22 = vld [vmem:[#allocation6 + $0x3a4] ss:$16 sps:$4 sm:$0xff]   ;;  %v3125_v25 = vld [vmem:[#allocation6 + $0x3a8] ss:$16 sps:$4 sm:$0xff]   ;;  %v3139_v32 = vld [vmem:[#allocation6 + $0x3ec] ss:$16 sps:$4 sm:$0xff]  }
 0x250   : > { %1978 = vmatmul.mubr.bf16.vlgmr.msra.gmra.mrb[4].mxu0 %v1151_v27  ;;  %2060 = vmatmul.mubr.bf16.vlgmr.msra.gmra.mrb[4].mxu1 %v1151_v27  ;;  %v3133_v27 = vld [vmem:[#allocation6 + $0x3cc] ss:$16 sps:$4 sm:$0xff]   ;;  %v3136_v31 = vld [vmem:[#allocation6 + $0x3e4] ss:$16 sps:$4 sm:$0xff]  }
 0x251   : > { %1987 = vmatpush1.bf16.msra.mxu0 %v3043_v23  ;;  %2069 = vmatpush1.bf16.msra.mxu1 %v3046_v24  ;;  %v3127_v23 = vld [vmem:[#allocation6 + $0x3ac] ss:$16 sps:$4 sm:$0xff]   ;;  %v3122_v24 = vld [vmem:[#allocation6 + $0x3a0] ss:$16 sps:$4 sm:$0xff]  }
 0x252   : > { %1988 = vmatprep.subr.bf16.mxu0 %v3051_v28  ;;  %2070 = vmatprep.subr.bf16.mxu1 %v3054_v29  ;;  %v3128_v28 = vld [vmem:[#allocation6 + $0x3c0] ss:$16 sps:$4 sm:$0xff]   ;;  %v3131_v29 = vld [vmem:[#allocation6 + $0x3c8] ss:$16 sps:$4 sm:$0xff]  }
 0x253   : > { %2018 = vmatprep.mubr.bf16.mxu0 %v1154_v38  ;;  %2100 = vmatprep.mubr.bf16.mxu1 %v1154_v38  ;;  %v2161_v35 = vld [vmem:[%s3820_s7 + $0x180] sm:$0xff] }
 0x254   : > { %v3137_v38 = vld [vmem:[#allocation6 + $0x3e8] ss:$16 sps:$4 sm:$0xff]  }
 0x255   : > { %1989 = vmatpush1.bf16.msra.mxu0 %v3049_v33  ;;  %2071 = vmatpush1.bf16.msra.mxu1 %v3052_v34  ;;  %v2129_v33 = vld [vmem:[%s3820_s7 + $0x80] sm:$0xff]  ;;  %v2130_v34 = vld [vmem:[%s3820_s7 + $0x88] sm:$0xff] }
 0x256   : > { %1990 = vmatprep.subr.bf16.mxu0 %v3057_v36  ;;  %2072 = vmatprep.subr.bf16.mxu1 %v3060_v37  ;;  %v2162_v36 = vld [vmem:[%s3820_s7 + $0x188] sm:$0xff] }
 0x257   : > { %v3134_v37 = vld [vmem:[#allocation6 + $0x3e0] ss:$16 sps:$4 sm:$0xff]  }
 0x259   : > { %1991 = vmatpush1.bf16.msra.mxu0 %v3055_v39  ;;  %2073 = vmatpush1.bf16.msra.mxu1 %v3058_v40  ;;  %v2113_v39 = vld [vmem:[%s3820_s7] sm:$0xff]  ;;  %v2114_v40 = vld [vmem:[%s3820_s7 + $0x8] sm:$0xff] }
 0x25a   : > { %1992 = vmatprep.subr.bf16.mxu0 %v3063_v41  ;;  %2074 = vmatprep.subr.bf16.mxu1 %v3066_v42  ;;  %v1149_v41 = vmax.f32 %v3591_v30, 0.0  ;;  %v2695_v42 = vpack.c.bf16 %v2130_v34, %v2129_v33  ;;  %v2132_v30 = vld [vmem:[%s3820_s7 + $0x98] sm:$0xff]  ;;  %v2153_v34 = vld [vmem:[%s3820_s7 + $0x140] sm:$0xff] }
 0x25d   : > { %1993 = vmatpush1.bf16.msra.mxu0 %v3061_v43  ;;  %2075 = vmatpush1.bf16.msra.mxu1 %v3064_v44  ;;  %v2727_v43 = vpack.c.bf16 %v2162_v36, %v2161_v35  ;;  %v2145_v44 = vld [vmem:[%s3820_s7 + $0x100] sm:$0xff]  ;;  %v2154_v35 = vld [vmem:[%s3820_s7 + $0x148] sm:$0xff]  ;;  %v2139_v36 = vld [vmem:[%s3820_s7 + $0xd0] sm:$0xff] }
 0x25e   : > { %1994 = vmatprep.subr.bf16.mxu0 %v3069_v45  ;;  %2076 = vmatprep.subr.bf16.mxu1 %v3072_v46  ;;  %v2146_v45 = vld [vmem:[%s3820_s7 + $0x108] sm:$0xff]  ;;  %v2131_v46 = vld [vmem:[%s3820_s7 + $0x90] sm:$0xff] }
 0x261   : > { %1995 = vmatpush1.bf16.msra.mxu0 %v3067_v47  ;;  %2077 = vmatpush1.bf16.msra.mxu1 %v3070_v48  ;;  %v2163_v47 = vld [vmem:[%s3820_s7 + $0x190] sm:$0xff]  ;;  %v2164_v48 = vld [vmem:[%s3820_s7 + $0x198] sm:$0xff] }
 0x262   : > { %1996 = vmatprep.subr.bf16.mxu0 %v3075_v49  ;;  %2078 = vmatprep.subr.bf16.mxu1 %v3078_v50  ;;  %v2697_v49 = vpack.c.bf16 %v2114_v40, %v2113_v39  ;;  %v2729_v50 = vpack.c.bf16 %v2146_v45, %v2145_v44  ;;  %v2172_v39 = vld [vmem:[%s3820_s7 + $0x1d8] sm:$0xff] }
 0x265   : > { %1997 = vmatpush1.bf16.msra.mxu0 %v3073_v51  ;;  %2079 = vmatpush1.bf16.msra.mxu1 %v3076_v52  ;;  %v2115_v51 = vld [vmem:[%s3820_s7 + $0x10] sm:$0xff]  ;;  %v2116_v52 = vld [vmem:[%s3820_s7 + $0x18] sm:$0xff] }
 0x266   : > { %1998 = vmatprep.subr.bf16.mxu0 %v3081_v53  ;;  %2080 = vmatprep.subr.bf16.mxu1 %v3084_v54  ;;  %v1153_v53 = vpack.c.bf16 %v1149_v41, %v1149_v41  ;;  %v2699_v54 = vpack.c.bf16 %v2132_v30, %v2131_v46  ;;  %v2745_v41 = vpack.c.bf16 %v2154_v35, %v2153_v34  ;;  %v2155_v46 = vld [vmem:[%s3820_s7 + $0x150] sm:$0xff]  ;;  %v2156_v30 = vld [vmem:[%s3820_s7 + $0x158] sm:$0xff] }
 0x269   : > { %1999 = vmatpush1.bf16.msra.mxu0 %v3079_v55  ;;  %2081 = vmatpush1.bf16.msra.mxu1 %v3082_v56  ;;  %v2731_v55 = vpack.c.bf16 %v2164_v48, %v2163_v47  ;;  %v2147_v56 = vld [vmem:[%s3820_s7 + $0x110] sm:$0xff]  ;;  %v2141_v47 = vld [vmem:[%s3820_s7 + $0xe0] sm:$0xff]  ;;  %v2142_v48 = vld [vmem:[%s3820_s7 + $0xe8] sm:$0xff] }
 0x26a   : > { %2000 = vmatprep.subr.bf16.mxu0 %v3087_v58  ;;  %2082 = vmatprep.subr.bf16.mxu1 %v3090_v59  ;;  %v2148_v58 = vld [vmem:[%s3820_s7 + $0x118] sm:$0xff]  ;;  %v2133_v59 = vld [vmem:[%s3820_s7 + $0xa0] sm:$0xff] }
 0x26d   : > { %2001 = vmatpush1.bf16.msra.mxu0 %v3085_v60  ;;  %2083 = vmatpush1.bf16.msra.mxu1 %v3088_v62  ;;  %v2134_v60 = vld [vmem:[%s3820_s7 + $0xa8] sm:$0xff]  ;;  %v2165_v62 = vld [vmem:[%s3820_s7 + $0x1a0] sm:$0xff] }
 0x26e   : > { %2002 = vmatprep.subr.bf16.mxu0 %v3093_v63  ;;  %2084 = vmatprep.subr.bf16.mxu1 %v3096_v0  ;;  %v2166_v63 = vld [vmem:[%s3820_s7 + $0x1a8] sm:$0xff]  ;;  %v2701_v0 = vpack.c.bf16 %v2116_v52, %v2115_v51  ;;  %v2749_v52 = vpack.c.bf16 %v2156_v30, %v2155_v46 }
 0x271   : > { %2003 = vmatpush1.bf16.msra.mxu0 %v3091_v1  ;;  %2085 = vmatpush1.bf16.msra.mxu1 %v3094_v13  ;;  %v2733_v1 = vpack.c.bf16 %v2148_v58, %v2147_v56  ;;  %v2117_v13 = vld [vmem:[%s3820_s7 + $0x20] sm:$0xff]  ;;  %v2126_v56 = vld [vmem:[%s3820_s7 + $0x68] sm:$0xff] }
 0x272   : > { %2004 = vmatprep.subr.bf16.mxu0 %v3099_v2  ;;  %2086 = vmatprep.subr.bf16.mxu1 %v3102_v3  ;;  %v2118_v2 = vld [vmem:[%s3820_s7 + $0x28] sm:$0xff]  ;;  %v2703_v3 = vpack.c.bf16 %v2134_v60, %v2133_v59  ;;  %v2157_v58 = vld [vmem:[%s3820_s7 + $0x160] sm:$0xff] }
 0x273   : > { %v2158_v60 = vld [vmem:[%s3820_s7 + $0x168] sm:$0xff] }
 0x275   : > { %2005 = vmatpush1.bf16.msra.mxu0 %v3097_v5  ;;  %2087 = vmatpush1.bf16.msra.mxu1 %v3100_v6  ;;  %v2735_v5 = vpack.c.bf16 %v2166_v63, %v2165_v62  ;;  %v2149_v6 = vld [vmem:[%s3820_s7 + $0x120] sm:$0xff]  ;;  %v2753_v62 = vpack.c.bf16 %v2158_v60, %v2157_v58  ;;  %v2143_v63 = vld [vmem:[%s3820_s7 + $0xf0] sm:$0xff] }
 0x276   : > { %2006 = vmatprep.subr.bf16.mxu0 %v3105_v7  ;;  %2088 = vmatprep.subr.bf16.mxu1 %v3108_v9  ;;  %v2150_v7 = vld [vmem:[%s3820_s7 + $0x128] sm:$0xff]  ;;  %v2135_v9 = vld [vmem:[%s3820_s7 + $0xb0] sm:$0xff] }
 0x279   : > { %2007 = vmatpush1.bf16.msra.mxu0 %v3103_v11  ;;  %2089 = vmatpush1.bf16.msra.mxu1 %v3106_v12  ;;  %v2136_v11 = vld [vmem:[%s3820_s7 + $0xb8] sm:$0xff]  ;;  %v2167_v12 = vld [vmem:[%s3820_s7 + $0x1b0] sm:$0xff] }
 0x27a   : > { %2008 = vmatprep.subr.bf16.mxu0 %v3111_v14  ;;  %2090 = vmatprep.subr.bf16.mxu1 %v3114_v15  ;;  %v2168_v14 = vld [vmem:[%s3820_s7 + $0x1b8] sm:$0xff]  ;;  %v2705_v15 = vpack.c.bf16 %v2118_v2, %v2117_v13 }
 0x27b   : > { %v2176_v2 = vld [vmem:[%s3820_s7 + $0x1f8] sm:$0xff] }
 0x27d   : > { %2009 = vmatpush1.bf16.msra.mxu0 %v3109_v16  ;;  %2091 = vmatpush1.bf16.msra.mxu1 %v3112_v17  ;;  %v2737_v16 = vpack.c.bf16 %v2150_v7, %v2149_v6  ;;  %v2119_v17 = vld [vmem:[%s3820_s7 + $0x30] sm:$0xff] }
 0x27e   : > { %2010 = vmatprep.subr.bf16.mxu0 %v3117_v18  ;;  %2092 = vmatprep.subr.bf16.mxu1 %v3120_v19  ;;  %v2120_v18 = vld [vmem:[%s3820_s7 + $0x38] sm:$0xff]  ;;  %v2707_v19 = vpack.c.bf16 %v2136_v11, %v2135_v9  ;;  %v2159_v9 = vld [vmem:[%s3820_s7 + $0x170] sm:$0xff] }
 0x27f   : > { %v2160_v11 = vld [vmem:[%s3820_s7 + $0x178] sm:$0xff] }
 0x281   : > { %2011 = vmatpush1.bf16.msra.mxu0 %v3115_v20  ;;  %2093 = vmatpush1.bf16.msra.mxu1 %v3118_v21  ;;  %v2739_v20 = vpack.c.bf16 %v2168_v14, %v2167_v12  ;;  %v2151_v21 = vld [vmem:[%s3820_s7 + $0x130] sm:$0xff]  ;;  %v2757_v12 = vpack.c.bf16 %v2160_v11, %v2159_v9  ;;  %v1283_v14 = vld [vmem:[%s3819_s6] sm:$0xf] }
 0x282   : > { %2012 = vmatprep.subr.bf16.mxu0 %v3124_v22  ;;  %2094 = vmatprep.subr.bf16.mxu1 %v3127_v23  ;;  %v2152_v22 = vld [vmem:[%s3820_s7 + $0x138] sm:$0xff]  ;;  %v2137_v23 = vld [vmem:[%s3820_s7 + $0xc0] sm:$0xff] }
 0x285   : > { %2013 = vmatpush1.bf16.msra.mxu0 %v3122_v24  ;;  %2095 = vmatpush1.bf16.msra.mxu1 %v3125_v25  ;;  %v2138_v24 = vld [vmem:[%s3820_s7 + $0xc8] sm:$0xff]  ;;  %v2169_v25 = vld [vmem:[%s3820_s7 + $0x1c0] sm:$0xff] }
 0x286   : > { %2014 = vmatprep.subr.bf16.mxu0 %v3130_v26  ;;  %2096 = vmatprep.subr.bf16.mxu1 %v3133_v27  ;;  %v2170_v26 = vld [vmem:[%s3820_s7 + $0x1c8] sm:$0xff]  ;;  %v2709_v27 = vpack.c.bf16 %v2120_v18, %v2119_v17  ;;  %v1292_v17 = vrot.slane %v1283_v14, %v1129_v61  ;;  %v1300_v18 = vrot.slane %v1283_v14, %v1137_v8 }
 0x287   : > { %v2743_v33 = vpack.c.bf16 %v2170_v26, %v2169_v25  ;;  %v2619_v8 = vld [vmem:[#allocation3] ss:$0 sm:$0xff] }
 0x289   : > { %2015 = vmatpush1.bf16.msra.mxu0 %v3128_v28  ;;  %2097 = vmatpush1.bf16.msra.mxu1 %v3131_v29  ;;  %v2741_v28 = vpack.c.bf16 %v2152_v22, %v2151_v21  ;;  %v2121_v29 = vld [vmem:[%s3820_s7 + $0x40] sm:$0xff] }
 0x28a   : > { %2016 = vmatprep.subr.bf16.mxu0 %v3136_v31  ;;  %2098 = vmatprep.subr.bf16.mxu1 %v3139_v32  ;;  %v2122_v31 = vld [vmem:[%s3820_s7 + $0x48] sm:$0xff]  ;;  %v2711_v32 = vpack.c.bf16 %v2138_v24, %v2137_v23 }
 0x28b   : > { %v2713_v40 = vpack.c.bf16 %v2122_v31, %v2121_v29 }
 0x28d   : > { %2017 = vmatpush1.bf16.msra.mxu0 %v3134_v37  ;;  %2099 = vmatpush1.bf16.msra.mxu1 %v3137_v38  ;;  %v2140_v37 = vld [vmem:[%s3820_s7 + $0xd8] sm:$0xff]  ;;  %v2171_v38 = vld [vmem:[%s3820_s7 + $0x1d0] sm:$0xff] }
 0x28e   : > { %2696 = vmatprep.subr.bf16.mxu0 %v2695_v42  ;;  %2728 = vmatprep.subr.bf16.mxu1 %v2727_v43  ;;  %v2123_v42 = vld [vmem:[%s3820_s7 + $0x50] sm:$0xff]  ;;  %v2124_v43 = vld [vmem:[%s3820_s7 + $0x58] sm:$0xff]  ;;  %v2715_v44 = vpack.c.bf16 %v2140_v37, %v2139_v36  ;;  %v2747_v45 = vpack.c.bf16 %v2172_v39, %v2171_v38 }
 0x28f   : > { %v2717_v51 = vpack.c.bf16 %v2124_v43, %v2123_v42 }
 0x290   : > { %2019 = vmatmul.mubr.bf16.vlgmr.msra.gmra.mrb[4].mxu0 %v1153_v53  ;;  %2101 = vmatmul.mubr.bf16.vlgmr.msra.gmra.mrb[4].mxu1 %v1153_v53  ;;  %v2719_v53 = vpack.c.bf16 %v2142_v48, %v2141_v47 }
 0x291   : > { %2698 = vmatpush3.bf16.msra.mxu0 %v2697_v49  ;;  %2730 = vmatpush3.bf16.msra.mxu1 %v2729_v50  ;;  %v2173_v49 = vld [vmem:[%s3820_s7 + $0x1e0] sm:$0xff]  ;;  %v2174_v50 = vld [vmem:[%s3820_s7 + $0x1e8] sm:$0xff] }
 0x292   : > { %2700 = vmatprep.subr.bf16.mxu0 %v2699_v54  ;;  %2732 = vmatprep.subr.bf16.mxu1 %v2731_v55  ;;  %v2751_v54 = vpack.c.bf16 %v2174_v50, %v2173_v49  ;;  %v2125_v55 = vld [vmem:[%s3820_s7 + $0x60] sm:$0xff] }
 0x293   : > { %v2721_v59 = vpack.c.bf16 %v2126_v56, %v2125_v55 }
 0x295   : > { %2702 = vmatpush3.bf16.msra.mxu0 %v2701_v0  ;;  %2734 = vmatpush3.bf16.msra.mxu1 %v2733_v1  ;;  %v2144_v0 = vld [vmem:[%s3820_s7 + $0xf8] sm:$0xff]  ;;  %v2175_v1 = vld [vmem:[%s3820_s7 + $0x1f0] sm:$0xff] }
 0x296   : > { %2704 = vmatprep.subr.bf16.mxu0 %v2703_v3  ;;  %2736 = vmatprep.subr.bf16.mxu1 %v2735_v5  ;;  %v2723_v13 = vpack.c.bf16 %v2144_v0, %v2143_v63  ;;  %v2127_v3 = vld [vmem:[%s3820_s7 + $0x70] sm:$0xff]  ;;  %v2128_v5 = vld [vmem:[%s3820_s7 + $0x78] sm:$0xff]  ;;  %v2755_v6 = vpack.c.bf16 %v2176_v2, %v2175_v1 }
 0x297   : > { %v2725_v7 = vpack.c.bf16 %v2128_v5, %v2127_v3 }
 0x299   : > { %2706 = vmatpush3.bf16.msra.mxu0 %v2705_v15  ;;  %2738 = vmatpush3.bf16.msra.mxu1 %v2737_v16  ;;  %v1288_v15 = vrot.slane %v1283_v14, %v1125_v57  ;;  %v1296_v16 = vrot.slane %v1283_v14, %v1133_v4 }
 0x29a   : > { %2708 = vmatprep.subr.bf16.mxu0 %v2707_v19  ;;  %2740 = vmatprep.subr.bf16.mxu1 %v2739_v20 }
 0x29d   : > { %2710 = vmatpush3.bf16.msra.mxu0 %v2709_v27  ;;  %2742 = vmatpush3.bf16.msra.mxu1 %v2741_v28 }
 0x29e   : > { %2712 = vmatprep.subr.bf16.mxu0 %v2711_v32  ;;  %2744 = vmatprep.subr.bf16.mxu1 %v2743_v33 }
 0x2a1   : > { %2714 = vmatpush3.bf16.msra.mxu0 %v2713_v40  ;;  %2746 = vmatpush3.bf16.msra.mxu1 %v2745_v41 }
 0x2a2   : > { %2716 = vmatprep.subr.bf16.mxu0 %v2715_v44  ;;  %2748 = vmatprep.subr.bf16.mxu1 %v2747_v45 }
 0x2a5   : > { %2718 = vmatpush3.bf16.msra.mxu0 %v2717_v51  ;;  %2750 = vmatpush3.bf16.msra.mxu1 %v2749_v52 }
 0x2a6   : > { %2720 = vmatprep.subr.bf16.mxu0 %v2719_v53  ;;  %2752 = vmatprep.subr.bf16.mxu1 %v2751_v54 }
 0x2a9   : > { %2722 = vmatpush3.bf16.msra.mxu0 %v2721_v59  ;;  %2754 = vmatpush3.bf16.msra.mxu1 %v2753_v62 }
 0x2aa   : > { %2724 = vmatprep.subr.bf16.mxu0 %v2723_v13  ;;  %2756 = vmatprep.subr.bf16.mxu1 %v2755_v6 }
 0x2ad   : > { %2726 = vmatpush3.bf16.msra.mxu0 %v2725_v7  ;;  %2758 = vmatpush3.bf16.msra.mxu1 %v2757_v12 }
 0x363   : > { %v2020_v19 = vpop.f32.mrb[4].mxu0  ;;  %v2102_v20 = vpop.f32.mrb[4].mxu1 }
 0x364   : > { %v2759_v21 = vadd.f32 %v2020_v19, %v1288_v15  ;;  %v2761_v22 = vadd.f32 %v2102_v20, %v1296_v16  ;;  %v2022_v23 = vpop.f32.mrb[5].mxu0  ;;  %v2104_v24 = vpop.f32.mrb[5].mxu1 }
 0x365   : > { %v2760_v25 = vadd.f32 %v2022_v23, %v1292_v17  ;;  %v2762_v26 = vadd.f32 %v2104_v24, %v1300_v18  ;;  %v2024_v27 = vpop.f32.mrb[6].mxu0  ;;  %v2106_v28 = vpop.f32.mrb[6].mxu1 }
 0x366   : > { %v2025_v57 = vpop.f32.mrb[7].mxu0  ;;  %v2107_v29 = vpop.f32.mrb[7].mxu1  ;;  %v2109_v32 = vmax.f32 %v2759_v21, 0.0  ;;  %v2111_v33 = vmax.f32 %v2761_v22, 0.0 }
 0x367   : > { %v2110_v31 = vmax.f32 %v2760_v25, 0.0  ;;  %v2112_v4 = vmax.f32 %v2762_v26, 0.0 }
 0x369   : > { %2248 = vmatprep.mubr.f32.mxu0 %v2110_v31  ;;  %2318 = vmatprep.mubr.f32.mxu1 %v2112_v4 }
 0x36a   : > { %2249 = vmatmul.mubr.f32.vlgmr.msra.gmra.mrb[8].mxu0 %v2109_v32  ;;  %2319 = vmatmul.mubr.f32.vlgmr.msra.gmra.mrb[8].mxu1 %v2111_v33 }
 0x43d   : > { %v2657_v10 = vpop.f32.mrb[8].mxu0  ;;  %v2692_v61 = vpop.f32.mrb[8].mxu1 }
 0x43e   : > { %v2658_v34 = vpop.f32.mrb[9].mxu0  ;;  %v2693_v35 = vpop.f32.mrb[9].mxu1 }
 0x43f   : > { %v2659_v36 = vadd.f32 %v2658_v34, %v2657_v10  ;;  %v2694_v37 = vadd.f32 %v2693_v35, %v2692_v61 }
 0x441   : > { %v2251_v38 = vadd.f32 %v2659_v36, %v2619_v8 }
 0x443   : > { %v2321_v39 = vadd.f32 %v2694_v37, %v2251_v38 }
 0x445   : > { %v2620_v40 = vmul.f32 -1.442695, %v2321_v39 }
 0x447   : > { %3140 = vpow2.f32 %v2620_v40 }
 0x451   : > { %v3141_v41 = vpop.eup %3140 }
 0x452   : > { %v2327_v42 = vadd.f32 1.0, %v3141_v41 }
 0x454   : > { %3142 = vrcp.f32 %v2327_v42 }
 0x45e   : > { %v3143_v43 = vpop.eup %3142 }
 0x45f   : > { %2331 = vst.msk [vmem:[%s3822_s9] sm:$0xf] %vm2330_vm2, %v3143_v43 }
 0x460 PF: > { %p22_p5 = scmp.ge.s32.totalorder %s3347_s20, 6   ;;  %s3835_s11 = smov %s3232_s12 }
 0x461   : > { %s3836_s12 = smov %s3236_s13  ;;  %s3837_s13 = smov %s3376_s24 }
 0x462   : > { %s3838_s14 = smov %s3347_s20  ;;  %24 = sbr.rel (!%p22_p5) target bundleno = 7 (0x7), region = 107 }
 0x469   :  { %2343 = vsyncpa [#allocation5], 1 }
 0x46a   :  { %2345 = vsyncpa [#allocation5 + $0x1], 1 }
 0x46b   :  { %2346 = vsyncpa [#allocation7], 1 }

</bundles_post_ra>
